<compile_context>
chip_gen: v6e
topology: v6e:2x2x1
jax: 0.10.0
libtpu: 0.0.40
codegen_flags: <defaults>
</compile_context>

<pallas_src>
from functools import partial

import jax
import jax.numpy as jnp
from jax.experimental import pallas as pl
from jax.experimental.pallas import tpu as pltpu


# --------------------------------------------------------------------------
# Kernel: one grid step = `batch_block` samples, rows flattened as (b, n).
# --------------------------------------------------------------------------
def tgcrn_cell_kernel(x_ref, adj_ref, e_ref, wg_ref, bg_ref, wu_ref, bu_ref,
                      h_ref, *, cheb_k, hidden_dim, n_nodes, batch_block,
                      mm_dtype):
    """x_ref  : (R, Ci)        R = batch_block * n_nodes, rows (b, n)-major
       adj_ref: (N, N)         precomputed softmax(relu(E@E^T)) in mm_dtype
       e_ref  : (R, D)         node embeddings tiled batch_block times (f32)
       wg_ref : (K*Ci, D*2H)   gate weight pool, rows (k,c)-major, cols (d,o)
       bg_ref : (R, 2H)        E @ bg_pool, tiled (f32)
       wu_ref : (K*(Ci+H), D*H) update weight pool
       bu_ref : (R, H)         E @ bu_pool, tiled (f32)
       h_ref  : (R, H)         output hidden state
    """
    f32 = jnp.float32
    x = x_ref[...].astype(f32)                       # (R, Ci) lane-dense rows
    adj = adj_ref[...]                               # (N, N)  mm_dtype
    e = e_ref[...]                                   # (R, D)  f32
    d_emb = e.shape[-1]

    # Embedding column slices used by BOTH GCN passes — built once (JAX does
    # not CSE broadcast_in_dim, so do not rebuild them inside gcn()).
    e_cols = [e[:, d:d + 1] for d in range(d_emb)]

    def propagate(feat):
        """A @ feat applied independently to each sample of the block."""
        fm = feat.astype(mm_dtype)
        outs = [
            jnp.dot(adj, fm[b * n_nodes:(b + 1) * n_nodes, :],
                    preferred_element_type=f32)
            for b in range(batch_block)
        ]
        return outs[0] if batch_block == 1 else jnp.concatenate(outs, axis=0)

    def gcn(feat, w2, bias_rows):
        # feat: (R, C) f32 ; w2: (K*C, D*O) mm_dtype ; bias_rows: (R, O) f32
        c_out = bias_rows.shape[-1]
        # Chebyshev recursion on aggregated features (T_k matrices are never
        # materialized):  y0 = feat, y1 = A@y0, yk = 2*A@y_{k-1} - y_{k-2}.
        # NOTE: cheb_k == 1 keeps only the identity support (reference code
        # needs cheb_k >= 2 anyway).
        ys = [feat]
        if cheb_k > 1:
            ys.append(propagate(feat))
        for _ in range(2, cheb_k):
            ys.append(2.0 * propagate(ys[-1]) - ys[-2])
        xg = ys[0] if len(ys) == 1 else jnp.concatenate(ys, axis=-1)  # (R,K*C)

        # One fat lane-dense MXU matmul over the whole weight pool:
        #   tmp[r, d*O + o] = sum_{k,c} xg[r, k*C + c] * Wpool[d, k, c, o]
        tmp = jnp.dot(xg.astype(mm_dtype), w2,
                      preferred_element_type=f32)                    # (R,D*O)

        # Per-node embedding contraction over D: unrolled lane-dense MACs on
        # column slices (no 3-D reshape, no cross-sublane reduction).
        out = bias_rows
        for d in range(d_emb):
            out = out + e_cols[d] * tmp[:, d * c_out:(d + 1) * c_out]
        return out

    # ---- gate GCN: z, r = split(sigmoid(gate(x))) ---------------------------
    zr = jax.nn.sigmoid(gcn(x, wg_ref[...], bg_ref[...]))            # (R, 2H)
    z = zr[:, :hidden_dim]
    r = zr[:, hidden_dim:]

    # ---- candidate GCN: hc = tanh(update(cat(x, z))) ------------------------
    cand = jnp.concatenate([x, z], axis=-1)                          # (R,Ci+H)
    hc = jnp.tanh(gcn(cand, wu_ref[...], bu_ref[...]))               # (R, H)

    # ---- GRU-style mix (reference mixes with x, not the recurrent state) ----
    h_ref[...] = (r * x + (1.0 - r) * hc).astype(h_ref.dtype)


# --------------------------------------------------------------------------
# Batch-block picker: M >= 256 rows, >= 2 grid steps (v7x dual TC), VMEM cap.
# --------------------------------------------------------------------------
def _pick_batch_block(batch, node_num, dim_in, dim_out, cheb_k, embed_dim,
                      vmem_budget_bytes=32 * 1024 * 1024):
    target_rows = 256                                  # v6e/v7x MXU M fill
    bblk = min(batch, max(1, -(-target_rows // node_num)))
    if batch >= 2:
        bblk = min(bblk, -(-batch // 2))               # keep >= 2 grid steps

    def step_bytes(bb):                                # rough f32 live values
        rows = bb * node_num
        kc = cheb_k * (dim_in + dim_out)
        do = embed_dim * 2 * dim_out
        return 4 * rows * (kc + do + 8 * 2 * dim_out)

    while bblk > 1 and step_bytes(bblk) > vmem_budget_bytes:
        bblk -= 1
    while bblk > 1 and (bblk * node_num) % 8 != 0:
        bblk -= 1
    if (bblk * node_num) % 8 != 0:
        bblk = batch          # single full-extent block satisfies (8,128) rule
    return bblk


# --------------------------------------------------------------------------
# One-time preparation (loop-invariant if the cell runs inside a time scan).
# --------------------------------------------------------------------------
def tgcrn_cell_prepare(node_embeddings, params, *, cheb_k, batch_block,
                       mm_dtype=jnp.bfloat16):
    e = node_embeddings.astype(jnp.float32)                    # (N, D)
    # Adaptive adjacency — exact softmax, computed once (batch-invariant).
    adj = jax.nn.softmax(jnp.maximum(e @ e.T, 0.0), axis=1).astype(mm_dtype)

    wg = params['wg_pool'].astype(jnp.float32)                 # (D, K, Ci, 2H)
    wu = params['wu_pool'].astype(jnp.float32)                 # (D, K, Ci+H, H)
    d, k, ci, o2 = wg.shape
    _, _, cu, o1 = wu.shape
    # Flatten weight pools to (K*C, D*O): W2[(k,c),(d,o)] = pool[d,k,c,o].
    wg2 = jnp.transpose(wg, (1, 2, 0, 3)).reshape(k * ci, d * o2).astype(mm_dtype)
    wu2 = jnp.transpose(wu, (1, 2, 0, 3)).reshape(k * cu, d * o1).astype(mm_dtype)

    bg = e @ params['bg_pool'].astype(jnp.float32)             # (N, 2H)
    bu = e @ params['bu_pool'].astype(jnp.float32)             # (N, H)

    return {
        'adj': adj, 'wg2': wg2, 'wu2': wu2,
        'e_rep': jnp.tile(e, (batch_block, 1)),
        'bg_rep': jnp.tile(bg, (batch_block, 1)),
        'bu_rep': jnp.tile(bu, (batch_block, 1)),
        'cheb_k': cheb_k, 'batch_block': batch_block, 'mm_dtype': mm_dtype,
        'node_num': e.shape[0], 'embed_dim': d, 'dim_in': ci, 'hidden_dim': o1,
    }


# --------------------------------------------------------------------------
# Forward call: x (B, N, Ci), state (B, N, H) [unused by reference forward].
# --------------------------------------------------------------------------
def tgcrn_cell(x, state, prep):
    del state  # kept for API parity with the PyTorch module
    b, n, ci = x.shape
    hid = prep['hidden_dim']
    d = prep['embed_dim']
    k = prep['cheb_k']
    bblk = prep['batch_block']
    assert n == prep['node_num'] and ci == prep['dim_in']
    assert ci == hid, "TGCRNCell forward requires dim_in == dim_out (r * x mix)"

    b_pad = -(-b // bblk) * bblk
    rows = bblk * n
    x_rows = x.reshape(b * n, ci).astype(jnp.float32)
    if b_pad != b:
        x_rows = jnp.concatenate(
            [x_rows, jnp.zeros(((b_pad - b) * n, ci), jnp.float32)], axis=0)

    kernel = partial(tgcrn_cell_kernel, cheb_k=k, hidden_dim=hid, n_nodes=n,
                     batch_block=bblk, mm_dtype=prep['mm_dtype'])

    grid_spec = pltpu.PrefetchScalarGridSpec(
        num_scalar_prefetch=0,
        grid=(b_pad // bblk,),                    # batch blocks, parallel
        in_specs=[
            pl.BlockSpec((rows, ci), lambda i: (i, 0)),                # x rows
            pl.BlockSpec((n, n), lambda i: (0, 0)),                    # adj
            pl.BlockSpec((rows, d), lambda i: (0, 0)),                 # E tiled
            pl.BlockSpec((k * ci, d * 2 * hid), lambda i: (0, 0)),     # gate W
            pl.BlockSpec((rows, 2 * hid), lambda i: (0, 0)),           # gate b
            pl.BlockSpec((k * (ci + hid), d * hid), lambda i: (0, 0)), # upd W
            pl.BlockSpec((rows, hid), lambda i: (0, 0)),               # upd b
        ],
        out_specs=pl.BlockSpec((rows, hid), lambda i: (i, 0)),
    )
    out = pl.pallas_call(
        kernel,
        out_shape=jax.ShapeDtypeStruct((b_pad * n, hid), jnp.float32),
        grid_spec=grid_spec,
        compiler_params=pltpu.CompilerParams(
            dimension_semantics=("parallel",),   # megacore-shard over batch
            vmem_limit_bytes=48 * 1024 * 1024,   # headroom under v7x 64 MiB
        ),
    )(x_rows, prep['adj'], prep['e_rep'], prep['wg2'], prep['bg_rep'],
      prep['wu2'], prep['bu_rep'])
    return out[:b * n].reshape(b, n, hid)


# ---------------- pure-JAX reference (mirrors the PyTorch semantics) --------
def _gcn_ref(x, e, wpool, bpool, cheb_k):
    n = e.shape[0]
    adj = jax.nn.softmax(jnp.maximum(e @ e.T, 0.0), axis=1)
    sup = [jnp.eye(n, dtype=jnp.float32), adj]
    for _ in range(2, cheb_k):
        sup.append(2.0 * adj @ sup[-1] - sup[-2])
    sup = jnp.stack(sup, 0)                                        # (K, N, N)
    w = jnp.einsum('nd,dkio->nkio', e, wpool)
    b = e @ bpool
    xg = jnp.einsum('knm,bmc->bknc', sup, x).transpose(0, 2, 1, 3)  # (B,N,K,C)
    return jnp.einsum('bnki,nkio->bno', xg, w) + b


def _cell_ref(x, e, params, cheb_k, hid):
    zr = jax.nn.sigmoid(_gcn_ref(x, e, params['wg_pool'], params['bg_pool'],
                                 cheb_k))
    z, r = zr[..., :hid], zr[..., hid:]
    cand = jnp.concatenate([x, z], axis=-1)
    hc = jnp.tanh(_gcn_ref(cand, e, params['wu_pool'], params['bu_pool'],
                           cheb_k))
    return r * x + (1.0 - r) * hc


if __name__ == "__main__":
    # small shapes consistent with the module:
    # batch=4, node_num=16, dim_in=dim_out=32 (required so r*x broadcasts),
    # cheb_k=3, embed_dim=8
    B, N, CI, H, D, K = 4, 16, 32, 32, 8, 3

    key = jax.random.PRNGKey(0)
    ks = jax.random.split(key, 7)
    x = jax.random.normal(ks[0], (B, N, CI), jnp.float32)
    state = jnp.zeros((B, N, H), jnp.float32)        # init_hidden_state(batch)
    node_emb = jax.random.normal(ks[1], (N, D), jnp.float32)

    params = {
        'wg_pool': 0.1 * jax.random.normal(ks[2], (D, K, CI, 2 * H), jnp.float32),
        'bg_pool': 0.1 * jax.random.normal(ks[3], (D, 2 * H), jnp.float32),
        'wu_pool': 0.1 * jax.random.normal(ks[4], (D, K, CI + H, H), jnp.float32),
        'bu_pool': 0.1 * jax.random.normal(ks[5], (D, H), jnp.float32),
    }

    h_ref = _cell_ref(x, node_emb, params, K, H)

    bblk = _pick_batch_block(B, N, CI, H, K, D)

    # Strict correctness check with f32 MXU inputs (exact softmax, no approx).
    prep32 = tgcrn_cell_prepare(node_emb, params, cheb_k=K, batch_block=bblk,
                                mm_dtype=jnp.float32)
    h32 = jax.block_until_ready(tgcrn_cell(x, state, prep32))
    assert h32.shape == (B, N, H)
    err32 = float(jnp.max(jnp.abs(h32 - h_ref)))
    assert err32 < 5e-3, err32

    # Optimized path: bf16 MXU inputs with f32 accumulation (looser tolerance).
    prepbf = tgcrn_cell_prepare(node_emb, params, cheb_k=K, batch_block=bblk,
                                mm_dtype=jnp.bfloat16)
    hbf = jax.block_until_ready(tgcrn_cell(x, state, prepbf))
    errbf = float(jnp.max(jnp.abs(hbf - h_ref)))
    assert errbf < 1e-1, errbf

    # Batch that does not divide the batch block (exercises the padding path).
    B2 = 3
    x2 = jax.random.normal(ks[6], (B2, N, CI), jnp.float32)
    h2 = jax.block_until_ready(
        tgcrn_cell(x2, jnp.zeros((B2, N, H), jnp.float32), prep32))
    err2 = float(jnp.max(jnp.abs(h2 - _cell_ref(x2, node_emb, params, K, H))))
    assert err2 < 5e-3, err2

    print("KERNEL_OK")
</pallas_src>

<mosaic_0001>
module attributes {stable_mosaic.version = 11 : i64} {
  func.func @tgcrn_cell_kernel(%arg0: i32, %arg1: memref<32x32xf32, #tpu.memory_space<vmem>>, %arg2: memref<16x16xf32, #tpu.memory_space<vmem>>, %arg3: memref<32x8xf32, #tpu.memory_space<vmem>>, %arg4: memref<96x512xf32, #tpu.memory_space<vmem>>, %arg5: memref<32x64xf32, #tpu.memory_space<vmem>>, %arg6: memref<192x256xf32, #tpu.memory_space<vmem>>, %arg7: memref<32x32xf32, #tpu.memory_space<vmem>>, %arg8: memref<32x32xf32, #tpu.memory_space<vmem>>) attributes {dimension_semantics = [#tpu.dimension_semantics<parallel>], iteration_bounds = array<i64: 2>, scalar_prefetch = 0 : i64, scratch_operands = 0 : i64, tpu.core_type = #tpu.core_type<tc>, window_params = [{transform_indices = @transform_0, window_bounds = array<i64: 32, 32>}, {pipeline_mode = #tpu.pipeline_mode<synchronous>, transform_indices = @transform_1, window_bounds = array<i64: 16, 16>}, {pipeline_mode = #tpu.pipeline_mode<synchronous>, transform_indices = @transform_2, window_bounds = array<i64: 32, 8>}, {pipeline_mode = #tpu.pipeline_mode<synchronous>, transform_indices = @transform_3, window_bounds = array<i64: 96, 512>}, {pipeline_mode = #tpu.pipeline_mode<synchronous>, transform_indices = @transform_4, window_bounds = array<i64: 32, 64>}, {pipeline_mode = #tpu.pipeline_mode<synchronous>, transform_indices = @transform_5, window_bounds = array<i64: 192, 256>}, {pipeline_mode = #tpu.pipeline_mode<synchronous>, transform_indices = @transform_6, window_bounds = array<i64: 32, 32>}, {transform_indices = @transform_7, window_bounds = array<i64: 32, 32>}]} {
    %c0 = arith.constant 0 : index
    %c0_0 = arith.constant 0 : index
    %0 = vector.load %arg1[%c0, %c0_0] : memref<32x32xf32, #tpu.memory_space<vmem>>, vector<32x32xf32>
    %c0_1 = arith.constant 0 : index
    %c0_2 = arith.constant 0 : index
    %1 = vector.load %arg2[%c0_1, %c0_2] : memref<16x16xf32, #tpu.memory_space<vmem>>, vector<16x16xf32>
    %c0_3 = arith.constant 0 : index
    %c0_4 = arith.constant 0 : index
    %2 = vector.load %arg3[%c0_3, %c0_4] : memref<32x8xf32, #tpu.memory_space<vmem>>, vector<32x8xf32>
    %3 = vector.extract_strided_slice %2 {offsets = [0, 0], sizes = [32, 1], strides = [1, 1]} : vector<32x8xf32> to vector<32x1xf32>
    %4 = vector.extract_strided_slice %2 {offsets = [0, 1], sizes = [32, 1], strides = [1, 1]} : vector<32x8xf32> to vector<32x1xf32>
    %5 = vector.extract_strided_slice %2 {offsets = [0, 2], sizes = [32, 1], strides = [1, 1]} : vector<32x8xf32> to vector<32x1xf32>
    %6 = vector.extract_strided_slice %2 {offsets = [0, 3], sizes = [32, 1], strides = [1, 1]} : vector<32x8xf32> to vector<32x1xf32>
    %7 = vector.extract_strided_slice %2 {offsets = [0, 4], sizes = [32, 1], strides = [1, 1]} : vector<32x8xf32> to vector<32x1xf32>
    %8 = vector.extract_strided_slice %2 {offsets = [0, 5], sizes = [32, 1], strides = [1, 1]} : vector<32x8xf32> to vector<32x1xf32>
    %9 = vector.extract_strided_slice %2 {offsets = [0, 6], sizes = [32, 1], strides = [1, 1]} : vector<32x8xf32> to vector<32x1xf32>
    %10 = vector.extract_strided_slice %2 {offsets = [0, 7], sizes = [32, 1], strides = [1, 1]} : vector<32x8xf32> to vector<32x1xf32>
    %c0_5 = arith.constant 0 : index
    %c0_6 = arith.constant 0 : index
    %11 = vector.load %arg4[%c0_5, %c0_6] : memref<96x512xf32, #tpu.memory_space<vmem>>, vector<96x512xf32>
    %c0_7 = arith.constant 0 : index
    %c0_8 = arith.constant 0 : index
    %12 = vector.load %arg5[%c0_7, %c0_8] : memref<32x64xf32, #tpu.memory_space<vmem>>, vector<32x64xf32>
    %13 = vector.extract_strided_slice %0 {offsets = [0, 0], sizes = [16, 32], strides = [1, 1]} : vector<32x32xf32> to vector<16x32xf32>
    %cst = arith.constant dense<0.000000e+00> : vector<16x32xf32>
    %14 = tpu.matmul %1, %13, %cst {dimension_numbers = #tpu.dot_dimension_numbers<[1], [0], [0], [1], [0, 0, 1, 1], [], []>} : vector<16x16xf32>, vector<16x32xf32>, vector<16x32xf32> -> vector<16x32xf32>
    %15 = vector.extract_strided_slice %0 {offsets = [16, 0], sizes = [16, 32], strides = [1, 1]} : vector<32x32xf32> to vector<16x32xf32>
    %cst_9 = arith.constant dense<0.000000e+00> : vector<16x32xf32>
    %16 = tpu.matmul %1, %15, %cst_9 {dimension_numbers = #tpu.dot_dimension_numbers<[1], [0], [0], [1], [0, 0, 1, 1], [], []>} : vector<16x16xf32>, vector<16x32xf32>, vector<16x32xf32> -> vector<16x32xf32>
    %17 = tpu.concatenate %14, %16 in 0 : vector<16x32xf32>, vector<16x32xf32> -> vector<32x32xf32>
    %18 = vector.extract_strided_slice %17 {offsets = [0, 0], sizes = [16, 32], strides = [1, 1]} : vector<32x32xf32> to vector<16x32xf32>
    %cst_10 = arith.constant dense<0.000000e+00> : vector<16x32xf32>
    %19 = tpu.matmul %1, %18, %cst_10 {dimension_numbers = #tpu.dot_dimension_numbers<[1], [0], [0], [1], [0, 0, 1, 1], [], []>} : vector<16x16xf32>, vector<16x32xf32>, vector<16x32xf32> -> vector<16x32xf32>
    %20 = vector.extract_strided_slice %17 {offsets = [16, 0], sizes = [16, 32], strides = [1, 1]} : vector<32x32xf32> to vector<16x32xf32>
    %cst_11 = arith.constant dense<0.000000e+00> : vector<16x32xf32>
    %21 = tpu.matmul %1, %20, %cst_11 {dimension_numbers = #tpu.dot_dimension_numbers<[1], [0], [0], [1], [0, 0, 1, 1], [], []>} : vector<16x16xf32>, vector<16x32xf32>, vector<16x32xf32> -> vector<16x32xf32>
    %22 = tpu.concatenate %19, %21 in 0 : vector<16x32xf32>, vector<16x32xf32> -> vector<32x32xf32>
    %cst_12 = arith.constant 2.000000e+00 : f32
    %23 = vector.broadcast %cst_12 : f32 to vector<32x32xf32>
    %24 = arith.mulf %23, %22 : vector<32x32xf32>
    %25 = arith.subf %24, %0 : vector<32x32xf32>
    %26 = tpu.concatenate %0, %17, %25 in 1 : vector<32x32xf32>, vector<32x32xf32>, vector<32x32xf32> -> vector<32x96xf32>
    %cst_13 = arith.constant dense<0.000000e+00> : vector<32x512xf32>
    %27 = tpu.matmul %26, %11, %cst_13 {dimension_numbers = #tpu.dot_dimension_numbers<[1], [0], [0], [1], [0, 0, 1, 1], [], []>} : vector<32x96xf32>, vector<96x512xf32>, vector<32x512xf32> -> vector<32x512xf32>
    %28 = vector.extract_strided_slice %27 {offsets = [0, 0], sizes = [32, 64], strides = [1, 1]} : vector<32x512xf32> to vector<32x64xf32>
    %29 = vector.broadcast %3 : vector<32x1xf32> to vector<32x64xf32>
    %30 = arith.mulf %29, %28 : vector<32x64xf32>
    %31 = arith.addf %12, %30 : vector<32x64xf32>
    %32 = vector.extract_strided_slice %27 {offsets = [0, 64], sizes = [32, 64], strides = [1, 1]} : vector<32x512xf32> to vector<32x64xf32>
    %33 = vector.broadcast %4 : vector<32x1xf32> to vector<32x64xf32>
    %34 = arith.mulf %33, %32 : vector<32x64xf32>
    %35 = arith.addf %31, %34 : vector<32x64xf32>
    %36 = vector.extract_strided_slice %27 {offsets = [0, 128], sizes = [32, 64], strides = [1, 1]} : vector<32x512xf32> to vector<32x64xf32>
    %37 = vector.broadcast %5 : vector<32x1xf32> to vector<32x64xf32>
    %38 = arith.mulf %37, %36 : vector<32x64xf32>
    %39 = arith.addf %35, %38 : vector<32x64xf32>
    %40 = vector.extract_strided_slice %27 {offsets = [0, 192], sizes = [32, 64], strides = [1, 1]} : vector<32x512xf32> to vector<32x64xf32>
    %41 = vector.broadcast %6 : vector<32x1xf32> to vector<32x64xf32>
    %42 = arith.mulf %41, %40 : vector<32x64xf32>
    %43 = arith.addf %39, %42 : vector<32x64xf32>
    %44 = vector.extract_strided_slice %27 {offsets = [0, 256], sizes = [32, 64], strides = [1, 1]} : vector<32x512xf32> to vector<32x64xf32>
    %45 = vector.broadcast %7 : vector<32x1xf32> to vector<32x64xf32>
    %46 = arith.mulf %45, %44 : vector<32x64xf32>
    %47 = arith.addf %43, %46 : vector<32x64xf32>
    %48 = vector.extract_strided_slice %27 {offsets = [0, 320], sizes = [32, 64], strides = [1, 1]} : vector<32x512xf32> to vector<32x64xf32>
    %49 = vector.broadcast %8 : vector<32x1xf32> to vector<32x64xf32>
    %50 = arith.mulf %49, %48 : vector<32x64xf32>
    %51 = arith.addf %47, %50 : vector<32x64xf32>
    %52 = vector.extract_strided_slice %27 {offsets = [0, 384], sizes = [32, 64], strides = [1, 1]} : vector<32x512xf32> to vector<32x64xf32>
    %53 = vector.broadcast %9 : vector<32x1xf32> to vector<32x64xf32>
    %54 = arith.mulf %53, %52 : vector<32x64xf32>
    %55 = arith.addf %51, %54 : vector<32x64xf32>
    %56 = vector.extract_strided_slice %27 {offsets = [0, 448], sizes = [32, 64], strides = [1, 1]} : vector<32x512xf32> to vector<32x64xf32>
    %57 = vector.broadcast %10 : vector<32x1xf32> to vector<32x64xf32>
    %58 = arith.mulf %57, %56 : vector<32x64xf32>
    %59 = arith.addf %55, %58 : vector<32x64xf32>
    %60 = arith.negf %59 : vector<32x64xf32>
    %61 = math.exp %60 : vector<32x64xf32>
    %cst_14 = arith.constant 1.000000e+00 : f32
    %62 = vector.broadcast %cst_14 : f32 to vector<32x64xf32>
    %63 = arith.addf %62, %61 : vector<32x64xf32>
    %64 = arith.divf %62, %63 : vector<32x64xf32>
    %65 = vector.extract_strided_slice %64 {offsets = [0, 0], sizes = [32, 32], strides = [1, 1]} : vector<32x64xf32> to vector<32x32xf32>
    %66 = vector.extract_strided_slice %64 {offsets = [0, 32], sizes = [32, 32], strides = [1, 1]} : vector<32x64xf32> to vector<32x32xf32>
    %67 = tpu.concatenate %0, %65 in 1 : vector<32x32xf32>, vector<32x32xf32> -> vector<32x64xf32>
    %c0_15 = arith.constant 0 : index
    %c0_16 = arith.constant 0 : index
    %68 = vector.load %arg6[%c0_15, %c0_16] : memref<192x256xf32, #tpu.memory_space<vmem>>, vector<192x256xf32>
    %c0_17 = arith.constant 0 : index
    %c0_18 = arith.constant 0 : index
    %69 = vector.load %arg7[%c0_17, %c0_18] : memref<32x32xf32, #tpu.memory_space<vmem>>, vector<32x32xf32>
    %70 = vector.extract_strided_slice %67 {offsets = [0, 0], sizes = [16, 64], strides = [1, 1]} : vector<32x64xf32> to vector<16x64xf32>
    %cst_19 = arith.constant dense<0.000000e+00> : vector<16x64xf32>
    %71 = tpu.matmul %1, %70, %cst_19 {dimension_numbers = #tpu.dot_dimension_numbers<[1], [0], [0], [1], [0, 0, 1, 1], [], []>} : vector<16x16xf32>, vector<16x64xf32>, vector<16x64xf32> -> vector<16x64xf32>
    %72 = vector.extract_strided_slice %67 {offsets = [16, 0], sizes = [16, 64], strides = [1, 1]} : vector<32x64xf32> to vector<16x64xf32>
    %cst_20 = arith.constant dense<0.000000e+00> : vector<16x64xf32>
    %73 = tpu.matmul %1, %72, %cst_20 {dimension_numbers = #tpu.dot_dimension_numbers<[1], [0], [0], [1], [0, 0, 1, 1], [], []>} : vector<16x16xf32>, vector<16x64xf32>, vector<16x64xf32> -> vector<16x64xf32>
    %74 = tpu.concatenate %71, %73 in 0 : vector<16x64xf32>, vector<16x64xf32> -> vector<32x64xf32>
    %75 = vector.extract_strided_slice %74 {offsets = [0, 0], sizes = [16, 64], strides = [1, 1]} : vector<32x64xf32> to vector<16x64xf32>
    %cst_21 = arith.constant dense<0.000000e+00> : vector<16x64xf32>
    %76 = tpu.matmul %1, %75, %cst_21 {dimension_numbers = #tpu.dot_dimension_numbers<[1], [0], [0], [1], [0, 0, 1, 1], [], []>} : vector<16x16xf32>, vector<16x64xf32>, vector<16x64xf32> -> vector<16x64xf32>
    %77 = vector.extract_strided_slice %74 {offsets = [16, 0], sizes = [16, 64], strides = [1, 1]} : vector<32x64xf32> to vector<16x64xf32>
    %cst_22 = arith.constant dense<0.000000e+00> : vector<16x64xf32>
    %78 = tpu.matmul %1, %77, %cst_22 {dimension_numbers = #tpu.dot_dimension_numbers<[1], [0], [0], [1], [0, 0, 1, 1], [], []>} : vector<16x16xf32>, vector<16x64xf32>, vector<16x64xf32> -> vector<16x64xf32>
    %79 = tpu.concatenate %76, %78 in 0 : vector<16x64xf32>, vector<16x64xf32> -> vector<32x64xf32>
    %cst_23 = arith.constant 2.000000e+00 : f32
    %80 = vector.broadcast %cst_23 : f32 to vector<32x64xf32>
    %81 = arith.mulf %80, %79 : vector<32x64xf32>
    %82 = arith.subf %81, %67 : vector<32x64xf32>
    %83 = tpu.concatenate %67, %74, %82 in 1 : vector<32x64xf32>, vector<32x64xf32>, vector<32x64xf32> -> vector<32x192xf32>
    %cst_24 = arith.constant dense<0.000000e+00> : vector<32x256xf32>
    %84 = tpu.matmul %83, %68, %cst_24 {dimension_numbers = #tpu.dot_dimension_numbers<[1], [0], [0], [1], [0, 0, 1, 1], [], []>} : vector<32x192xf32>, vector<192x256xf32>, vector<32x256xf32> -> vector<32x256xf32>
    %85 = vector.extract_strided_slice %84 {offsets = [0, 0], sizes = [32, 32], strides = [1, 1]} : vector<32x256xf32> to vector<32x32xf32>
    %86 = vector.broadcast %3 : vector<32x1xf32> to vector<32x32xf32>
    %87 = arith.mulf %86, %85 : vector<32x32xf32>
    %88 = arith.addf %69, %87 : vector<32x32xf32>
    %89 = vector.extract_strided_slice %84 {offsets = [0, 32], sizes = [32, 32], strides = [1, 1]} : vector<32x256xf32> to vector<32x32xf32>
    %90 = vector.broadcast %4 : vector<32x1xf32> to vector<32x32xf32>
    %91 = arith.mulf %90, %89 : vector<32x32xf32>
    %92 = arith.addf %88, %91 : vector<32x32xf32>
    %93 = vector.extract_strided_slice %84 {offsets = [0, 64], sizes = [32, 32], strides = [1, 1]} : vector<32x256xf32> to vector<32x32xf32>
    %94 = vector.broadcast %5 : vector<32x1xf32> to vector<32x32xf32>
    %95 = arith.mulf %94, %93 : vector<32x32xf32>
    %96 = arith.addf %92, %95 : vector<32x32xf32>
    %97 = vector.extract_strided_slice %84 {offsets = [0, 96], sizes = [32, 32], strides = [1, 1]} : vector<32x256xf32> to vector<32x32xf32>
    %98 = vector.broadcast %6 : vector<32x1xf32> to vector<32x32xf32>
    %99 = arith.mulf %98, %97 : vector<32x32xf32>
    %100 = arith.addf %96, %99 : vector<32x32xf32>
    %101 = vector.extract_strided_slice %84 {offsets = [0, 128], sizes = [32, 32], strides = [1, 1]} : vector<32x256xf32> to vector<32x32xf32>
    %102 = vector.broadcast %7 : vector<32x1xf32> to vector<32x32xf32>
    %103 = arith.mulf %102, %101 : vector<32x32xf32>
    %104 = arith.addf %100, %103 : vector<32x32xf32>
    %105 = vector.extract_strided_slice %84 {offsets = [0, 160], sizes = [32, 32], strides = [1, 1]} : vector<32x256xf32> to vector<32x32xf32>
    %106 = vector.broadcast %8 : vector<32x1xf32> to vector<32x32xf32>
    %107 = arith.mulf %106, %105 : vector<32x32xf32>
    %108 = arith.addf %104, %107 : vector<32x32xf32>
    %109 = vector.extract_strided_slice %84 {offsets = [0, 192], sizes = [32, 32], strides = [1, 1]} : vector<32x256xf32> to vector<32x32xf32>
    %110 = vector.broadcast %9 : vector<32x1xf32> to vector<32x32xf32>
    %111 = arith.mulf %110, %109 : vector<32x32xf32>
    %112 = arith.addf %108, %111 : vector<32x32xf32>
    %113 = vector.extract_strided_slice %84 {offsets = [0, 224], sizes = [32, 32], strides = [1, 1]} : vector<32x256xf32> to vector<32x32xf32>
    %114 = vector.broadcast %10 : vector<32x1xf32> to vector<32x32xf32>
    %115 = arith.mulf %114, %113 : vector<32x32xf32>
    %116 = arith.addf %112, %115 : vector<32x32xf32>
    %117 = math.tanh %116 : vector<32x32xf32>
    %118 = arith.mulf %66, %0 : vector<32x32xf32>
    %cst_25 = arith.constant 1.000000e+00 : f32
    %119 = vector.broadcast %cst_25 : f32 to vector<32x32xf32>
    %120 = arith.subf %119, %66 : vector<32x32xf32>
    %121 = arith.mulf %120, %117 : vector<32x32xf32>
    %122 = arith.addf %118, %121 : vector<32x32xf32>
    %c0_26 = arith.constant 0 : index
    %c0_27 = arith.constant 0 : index
    %123 = vector.load %arg8[%c0_26, %c0_27] : memref<32x32xf32, #tpu.memory_space<vmem>>, vector<32x32xf32>
    tpu.vector_store %arg8[%c0_26, %c0_27], %122 {strides = array<i32>} : memref<32x32xf32, #tpu.memory_space<vmem>>, vector<32x32xf32>,
    return
  }
  func.func @transform_0(%arg0: i32) -> (i32, i32) {
    %c0_i32 = arith.constant 0 : i32
    %c0_i32_0 = arith.constant 0 : i32
    return %arg0, %c0_i32 : i32, i32
  }
  func.func @transform_1(%arg0: i32) -> (i32, i32) {
    %c0_i32 = arith.constant 0 : i32
    %c0_i32_0 = arith.constant 0 : i32
    %c0_i32_1 = arith.constant 0 : i32
    return %c0_i32, %c0_i32_0 : i32, i32
  }
  func.func @transform_2(%arg0: i32) -> (i32, i32) {
    %c0_i32 = arith.constant 0 : i32
    %c0_i32_0 = arith.constant 0 : i32
    %c0_i32_1 = arith.constant 0 : i32
    return %c0_i32, %c0_i32_0 : i32, i32
  }
  func.func @transform_3(%arg0: i32) -> (i32, i32) {
    %c0_i32 = arith.constant 0 : i32
    %c0_i32_0 = arith.constant 0 : i32
    %c0_i32_1 = arith.constant 0 : i32
    return %c0_i32, %c0_i32_0 : i32, i32
  }
  func.func @transform_4(%arg0: i32) -> (i32, i32) {
    %c0_i32 = arith.constant 0 : i32
    %c0_i32_0 = arith.constant 0 : i32
    %c0_i32_1 = arith.constant 0 : i32
    return %c0_i32, %c0_i32_0 : i32, i32
  }
  func.func @transform_5(%arg0: i32) -> (i32, i32) {
    %c0_i32 = arith.constant 0 : i32
    %c0_i32_0 = arith.constant 0 : i32
    %c0_i32_1 = arith.constant 0 : i32
    return %c0_i32, %c0_i32_0 : i32, i32
  }
  func.func @transform_6(%arg0: i32) -> (i32, i32) {
    %c0_i32 = arith.constant 0 : i32
    %c0_i32_0 = arith.constant 0 : i32
    %c0_i32_1 = arith.constant 0 : i32
    return %c0_i32, %c0_i32_0 : i32, i32
  }
  func.func @transform_7(%arg0: i32) -> (i32, i32) {
    %c0_i32 = arith.constant 0 : i32
    %c0_i32_0 = arith.constant 0 : i32
    return %arg0, %c0_i32 : i32, i32
  }
}

</mosaic_0001>

<bundles_post_ra>
// kernel: tpu_custom_call.1
= control target key start
LH: loop header
LB: loop body
LE: loop exit
PB: predicated region body
PF: predicated region fallthrough
CT: control target
= control target key end

     0   :  { %12 = vsyncpa [#allocation3], 0  ;;  %s2974_s0 = inlined_call_operand.vmem [shape: f32[64,32], index: 0, kind: input, shape index: {}]   ;;  %s2975_s1 = inlined_call_operand.vmem [shape: f32[16,16], index: 1, kind: input, shape index: {}]   ;;  %s2976_s2 = inlined_call_operand.vmem [shape: f32[32,8], index: 2, kind: input, shape index: {}]   ;;  %s2977_s3 = inlined_call_operand.hbm [shape: f32[96,512], index: 3, kind: input, shape index: {}]   ;;  %s2978_s4 = inlined_call_operand.vmem [shape: f32[32,64], index: 4, kind: input, shape index: {}]   ;;  %s2979_s5 = inlined_call_operand.hbm [shape: f32[192,256], index: 5, kind: input, shape index: {}]   ;;  %s2980_s6 = inlined_call_operand.vmem [shape: f32[32,32], index: 6, kind: input, shape index: {}]   ;;  %s2981_s7 = inlined_call_operand.vmem [shape: f32[64,32], index: 7, kind: output, shape index: {}]  }
   0x1   :  { %13 = vsyncpa [#allocation5], 0  ;;  %s2373_s24 = smov 0  }
   0x2 LB: > { %s2315_s25 = smov [#allocation2]   ;;  %s2017_s27 = sadd.s32 4294967295, %s2313_s24   ;;  %s2313_s24 = sphi %s2373_s24, %s19_s24  }
   0x3   : > { %s220_s26 = sshll.u32 %s2315_s25, 4  ;;  %p2019_p0 = scmp.ge.s32.totalorder %s2313_s24, 1  ;;  %s221_s26 = int_to_ptr.vmem [resolvable:$true] %s220_s26 }
   0x4   : > { %p202_p1 = scmp.lt.s32.totalorder %s2313_s24, 3  ;;  %p2387_p3 = scmp.eq.s32.totalorder %s2017_s27, 0 }
   0x5   : > { %s2316_s30 = smov [#allocation4]   ;;  %s2258_s10 = scalar_lea.vmem %s221_s26, 6144 }
   0x6   : > { %p2381_p2 = pnand %p2019_p0, %p202_p1  ;;  %s236_s8 = sshll.u32 %s2316_s30, 4  ;;  %s237_s8 = int_to_ptr.vmem [resolvable:$true] %s236_s8 }
   0x7   : > { %p2259_p7 = scmp.ne.s32.totalorder %s221_s26, %s2258_s10  ;;  %p2266_p10 = scmp.lt.s32.totalorder %s221_s26, %s221_s26 }
   0x8   : > { %p2160_p4 = pneg %p2381_p2  ;;  %p2267_p11 = scmp.lt.s32.totalorder %s2258_s10, %s2258_s10 }
   0xa   : > { %p2395_p5 = pnand %p2387_p3, %p2160_p4  ;;  %p2268_p12 = por %p2267_p11, %p2266_p10 }
   0xc   : > { %p2249_p6 = pneg %p2395_p5 }
   0xe   : > { %p2261_p8 = pnand %p2259_p7, %p2249_p6 }
  0x10   : > { %p2262_p9 = pneg %p2261_p8 }
  0x12   : > { %p2269_p13 = pnand %p2268_p12, %p2262_p9 }
  0x14   : > { %2272 = shalt.err (!%p2269_p13)
}
  0x15   : > { %s2317_s11 = smov 512   ;;  %s2318_s12 = smov 32  }
  0x16   : > { %2163 = dma.hbm_to_vmem [thread:$0]  (!%p2395_p5), %s2977_s3, 6144, %s221_s26, [#allocation3], %s2317_s11, %s2317_s11, %s2318_s12  }
  0x17   : > { %s2284_s15 = scalar_lea.vmem %s237_s8, 6144  ;;  %p2292_p7 = scmp.lt.s32.totalorder %s237_s8, %s237_s8 }
  0x18   : > { %p2285_p0 = scmp.ne.s32.totalorder %s237_s8, %s2284_s15  ;;  %p2293_p8 = scmp.lt.s32.totalorder %s2284_s15, %s2284_s15 }
  0x1a   : > { %p2287_p1 = pnand %p2285_p0, %p2249_p6  ;;  %p2294_p10 = por %p2293_p8, %p2292_p7 }
  0x1c   : > { %p2288_p4 = pneg %p2287_p1 }
  0x1e   : > { %p2295_p9 = pnand %p2294_p10, %p2288_p4 }
  0x20   : > { %2298 = shalt.err (!%p2295_p9)
}
  0x21   : > { %s2319_s16 = smov 256   ;;  %s2320_s17 = smov 16  }
  0x22   : > { %2166 = dma.hbm_to_vmem [thread:$0]  (!%p2395_p5), %s2979_s5, 6144, %s237_s8, [#allocation5], %s2319_s16, %s2319_s16, %s2320_s17  }
  0x23   : > { %264 = sbr.rel (%p2381_p2) target bundleno = 2069 (0x815), region = 48 }
  0x28   : > { %2304 = dma.done.wait (%p2387_p3), [#allocation3], 6144  }
  0x29   : > { %2306 = vsyncadd (%p2387_p3), [#allocation3], 4294961152 }
  0x2a   : > { %2308 = dma.done.wait (%p2387_p3), [#allocation5], 6144  }
  0x2b   : > { %2310 = vsyncadd (%p2387_p3), [#allocation5], 4294961152  ;;  %s2026_s20 = sshll.u32 %s2017_s27, 2  ;;  %vm374_vm0 = vcmask 130048   ;;  %v2448_v2 = vld [vmem:[%s2975_s1] sm:$0xff]  ;;  %v2463_v5 = vld [vmem:[%s2975_s1 + $0x8] sm:$0xff] }
  0x2c   : > { %p301_p6 = scmp.lt.s32.totalorder %s2026_s20, 7  ;;  %2100 = vmatprep.mubr.msk.f32.mxu0 %vm374_vm0, %v2448_v2  ;;  %2107 = vmatprep.mubr.msk.f32.mxu1 %vm374_vm0, %v2448_v2  ;;  %s2321_s30 = smov 32   ;;  %v367_v10 = vld [vmem:[#allocation2 + $0x168] sm:$0xff]  ;;  %v366_v11 = vld [vmem:[#allocation2 + $0x160] sm:$0xff]  ;;  %v369_v34 = vld [vmem:[#allocation2 + $0x178] sm:$0xff]  ;;  %v2322_v35 = vmov 0.0  }
  0x2d   : > { %v363_v12 = vld [vmem:[#allocation2 + $0x148] sm:$0xff]  ;;  %v362_v13 = vld [vmem:[#allocation2 + $0x140] sm:$0xff]  ;;  %s2323_s8 = smov 64   ;;  %v2324_v46 = vmov 1   ;;  %v2325_v49 = vmov 3   ;;  %v321_v52 = vld [vmem:[%s2976_s2 + $0x18] sm:$0xff] }
  0x2e   : > { %s2998_s20 = smov (!%p301_p6, %s2026_s20), 7  ;;  %v359_v14 = vld [vmem:[#allocation2 + $0x128] sm:$0xff]  ;;  %v358_v15 = vld [vmem:[#allocation2 + $0x120] sm:$0xff]  ;;  %2197 = vset.pattern.permute.xlu1 %v2324_v46  ;;  %2199 = vset.pattern.permute.xlu0 %v2325_v49  ;;  %v2522_v53 = vld [vmem:[%s2976_s2 + $0x10] sm:$0xff]  ;;  %v2326_v54 = vmov 5   ;;  %v2327_v55 = vmov 7  }
  0x2f   : > { %s2027_s21 = sshll.u32 %s2998_s20, 3  ;;  %v355_v16 = vld [vmem:[#allocation2 + $0x108] sm:$0xff]  ;;  %v354_v17 = vld [vmem:[#allocation2 + $0x100] sm:$0xff]  ;;  %v2328_v56 = vmov 2   ;;  %v2329_v57 = vmov 4   ;;  %v2330_v58 = vmov 0  }
  0x30   : > { %s2437_s25 = scalar_lea.vmem %s2974_s0, %s2027_s21  ;;  %v351_v18 = vld [vmem:[#allocation2 + $0xe8] sm:$0xff]  ;;  %v350_v19 = vld [vmem:[#allocation2 + $0xe0] sm:$0xff]  ;;  %v2331_v59 = vmov 6   ;;  %vm721_vm1 = vcmask 261120   ;;  %vm731_vm2 = vcmask 785408   ;;  %vm726_vm3 = vcmask 523264   ;;  %s310_s16 = scalar_lea.vmem %s2981_s7, %s2027_s21 }
  0x31   : > { %v2440_v0 = vld [vmem:[%s2437_s25 + $0x8] sm:$0xff]  ;;  %v2443_v1 = vld [vmem:[%s2437_s25] sm:$0xff]  ;;  %v2454_v3 = vld [vmem:[%s2437_s25 + $0x18] sm:$0xff]  ;;  %s2332_s29 = smov 96  }
  0x32   : > { %2096 = vmatprep.subr.mxu0 %v2440_v0  ;;  %v2457_v4 = vld [vmem:[%s2437_s25 + $0x10] sm:$0xff]  ;;  %2103 = vmatprep.subr.mxu1 %v2454_v3  ;;  %v347_v20 = vld [vmem:[#allocation2 + $0xc8] sm:$0xff]  ;;  %v346_v21 = vld [vmem:[#allocation2 + $0xc0] sm:$0xff] }
  0x33   : > { %2097 = vmatpush3.msra.mxu0 %v2440_v0  ;;  %2104 = vmatpush3.msra.mxu1 %v2454_v3  ;;  %v343_v22 = vld [vmem:[#allocation2 + $0xa8] sm:$0xff]  ;;  %v342_v23 = vld [vmem:[#allocation2 + $0xa0] sm:$0xff] }
  0x34   : > { %2098 = vmatprep.subr.mxu0 %v2443_v1  ;;  %2105 = vmatprep.subr.mxu1 %v2457_v4  ;;  %v339_v24 = vld [vmem:[#allocation2 + $0x88] sm:$0xff]  ;;  %v338_v25 = vld [vmem:[#allocation2 + $0x80] sm:$0xff] }
  0x35   : > { %2099 = vmatpush3.msra.mxu0 %v2443_v1  ;;  %2106 = vmatpush3.msra.mxu1 %v2457_v4  ;;  %v335_v26 = vld [vmem:[#allocation2 + $0x68] sm:$0xff]  ;;  %v334_v27 = vld [vmem:[#allocation2 + $0x60] sm:$0xff] }
  0x36   : > { %2101 = vmatmul.mubr.msk.f32.vlgmr.msra.gmra.mxu0 %vm374_vm0, %v2463_v5  ;;  %2108 = vmatmul.mubr.msk.f32.vlgmr.msra.gmra.mxu1 %vm374_vm0, %v2463_v5  ;;  %v331_v28 = vld [vmem:[#allocation2 + $0x48] sm:$0xff]  ;;  %v330_v29 = vld [vmem:[#allocation2 + $0x40] sm:$0xff] }
  0x37   : > { %2114 = vmatprep.mubr.msk.f32.mxu0 %vm374_vm0, %v2448_v2  ;;  %2121 = vmatprep.mubr.msk.f32.mxu1 %vm374_vm0, %v2448_v2  ;;  %v327_v30 = vld [vmem:[#allocation2 + $0x28] sm:$0xff]  ;;  %v326_v31 = vld [vmem:[#allocation2 + $0x20] sm:$0xff] }
  0x38   : > { %v323_v32 = vld [vmem:[#allocation2 + $0x8] sm:$0xff]  ;;  %v322_v33 = vld [vmem:[#allocation2] sm:$0xff] }
  0x39   : > { %v318_v50 = vld [vmem:[%s2976_s2] sm:$0xff]  ;;  %v319_v51 = vld [vmem:[%s2976_s2 + $0x8] sm:$0xff] }
  0xf6   : > { %v2102_v6 = vpop.f32.mrf.mxu0  ;;  %v2482_v8 = vpop.f32.mrf.mxu1 }
  0xf7   : > { %695 = vrot.lane.b32.xlu1 %v2102_v6, %s2321_s30  ;;  %2110 = vmatprep.subr.mxu0 %v2102_v6 }
  0xf8   : > { %v447_v7 = vpop.f32.mrf.mxu0  ;;  %2111 = vmatpush3.msra.mxu0 %v2102_v6  ;;  %2117 = vmatprep.subr.mxu1 %v2482_v8  ;;  %v2486_v9 = vpop.f32.mrf.mxu1 }
  0xf9   : > { %693 = vrot.lane.b32.xlu0 %v447_v7, %s2321_s30  ;;  %2112 = vmatprep.subr.mxu0 %v447_v7 }
  0xfa   : > { %2113 = vmatpush3.msra.mxu0 %v447_v7  ;;  %2118 = vmatpush3.msra.mxu1 %v2482_v8  ;;  %v368_v7 = vld [vmem:[#allocation2 + $0x170] sm:$0xff] }
  0xfb   : > { %2115 = vmatmul.mubr.msk.f32.vlgmr.msra.gmra.mxu0 %vm374_vm0, %v2463_v5  ;;  %2119 = vmatprep.subr.mxu1 %v2486_v9 }
  0xfc   : > { %2128 = vmatprep.mubr.msk.f32.mxu0 %vm374_vm0, %v2448_v2  ;;  %2120 = vmatpush3.msra.mxu1 %v2486_v9 }
  0xfd   : > { %2122 = vmatmul.mubr.msk.f32.vlgmr.msra.gmra.mxu1 %vm374_vm0, %v2463_v5  ;;  %752 = vmatprep.subr.mxu1 %v367_v10  ;;  %v364_v10 = vld [vmem:[#allocation2 + $0x150] sm:$0xff] }
  0xfe   : > { %753 = vmatpush1.msra.mxu1 %v366_v11  ;;  %808 = vmatprep.mubr.f32.mxu1 %v2322_v35  ;;  %v361_v11 = vld [vmem:[#allocation2 + $0x138] sm:$0xff] }
  0xff   : > { %754 = vmatprep.subr.mxu1 %v363_v12 }
 0x100   : > { %755 = vmatpush1.msra.mxu1 %v362_v13 }
 0x101   : > { %756 = vmatprep.subr.mxu1 %v359_v14 }
 0x102   : > { %757 = vmatpush1.msra.mxu1 %v358_v15  ;;  %v360_v15 = vld [vmem:[#allocation2 + $0x130] sm:$0xff] }
 0x103   : > { %758 = vmatprep.subr.mxu1 %v355_v16 }
 0x104   : > { %759 = vmatpush1.msra.mxu1 %v354_v17  ;;  %v357_v17 = vld [vmem:[#allocation2 + $0x118] sm:$0xff] }
 0x105   : > { %760 = vmatprep.subr.mxu1 %v351_v18 }
 0x106   : > { %761 = vmatpush1.msra.mxu1 %v350_v19  ;;  %v356_v19 = vld [vmem:[#allocation2 + $0x110] sm:$0xff] }
 0x107   : > { %762 = vmatprep.subr.mxu1 %v347_v20  ;;  %v353_v20 = vld [vmem:[#allocation2 + $0xf8] sm:$0xff] }
 0x108   : > { %763 = vmatpush1.msra.mxu1 %v346_v21 }
 0x109   : > { %764 = vmatprep.subr.mxu1 %v343_v22  ;;  %v352_v22 = vld [vmem:[#allocation2 + $0xf0] sm:$0xff] }
 0x10a   : > { %765 = vmatpush1.msra.mxu1 %v342_v23 }
 0x10b   : > { %766 = vmatprep.subr.mxu1 %v339_v24  ;;  %v349_v24 = vld [vmem:[#allocation2 + $0xd8] sm:$0xff] }
 0x10c   : > { %767 = vmatpush1.msra.mxu1 %v338_v25 }
 0x10d   : > { %768 = vmatprep.subr.mxu1 %v335_v26 }
 0x10e   : > { %769 = vmatpush1.msra.mxu1 %v334_v27  ;;  %v348_v27 = vld [vmem:[#allocation2 + $0xd0] sm:$0xff] }
 0x10f   : > { %770 = vmatprep.subr.mxu1 %v331_v28  ;;  %v345_v28 = vld [vmem:[#allocation2 + $0xb8] sm:$0xff] }
 0x110   : > { %771 = vmatpush1.msra.mxu1 %v330_v29  ;;  %v344_v29 = vld [vmem:[#allocation2 + $0xb0] sm:$0xff] }
 0x111   : > { %772 = vmatprep.subr.mxu1 %v327_v30 }
 0x112   : > { %773 = vmatpush1.msra.mxu1 %v326_v31  ;;  %v341_v31 = vld [vmem:[#allocation2 + $0x98] sm:$0xff] }
 0x113   : > { %774 = vmatprep.subr.mxu1 %v323_v32  ;;  %v340_v32 = vld [vmem:[#allocation2 + $0x90] sm:$0xff] }
 0x114   : > { %775 = vmatpush1.msra.mxu1 %v322_v33  ;;  %v337_v33 = vld [vmem:[#allocation2 + $0x78] sm:$0xff] }
 0x115   : > { %841 = vmatprep.subr.mxu1 %v369_v34  ;;  %v336_v34 = vld [vmem:[#allocation2 + $0x70] sm:$0xff] }
 0x169   : > { %v696_v60 = vpop.permute.xlu1 %695 }
 0x16a   : > { %v723_v12 = vsel %vm721_vm1, %v2440_v0, %v696_v60 }
 0x16b   : > { %v694_v61 = vpop.permute.xlu0 %693 }
 0x16c   : > { %v722_v62 = vsel %vm721_vm1, %v2443_v1, %v694_v61 }
 0x1bb   : > { %v2116_v36 = vpop.f32.mrf.mxu0 }
 0x1bc   : > { %v682_v37 = vmul.f32 2.0, %v2116_v36  ;;  %v333_v36 = vld [vmem:[#allocation2 + $0x58] sm:$0xff] }
 0x1bd   : > { %v597_v38 = vpop.f32.mrf.mxu0  ;;  %v2123_v41 = vpop.f32.mrf.mxu1 }
 0x1be   : > { %v686_v39 = vsub.f32 %v682_v37, %v2440_v0  ;;  %v681_v40 = vmul.f32 2.0, %v597_v38  ;;  %v684_v44 = vmul.f32 2.0, %v2123_v41  ;;  %v332_v37 = vld [vmem:[#allocation2 + $0x50] sm:$0xff]  ;;  %v329_v38 = vld [vmem:[#allocation2 + $0x38] sm:$0xff] }
 0x1bf   : > { %v672_v43 = vpop.f32.mrf.mxu1  ;;  %v324_v41 = vld [vmem:[#allocation2 + $0x10] sm:$0xff] }
 0x1c0   : > { %v685_v42 = vsub.f32 %v681_v40, %v2443_v1  ;;  %711 = vrot.lane.b32.xlu1 %v686_v39, %s2323_s8  ;;  %v683_v45 = vmul.f32 2.0, %v672_v43  ;;  %v688_v48 = vsub.f32 %v684_v44, %v2454_v3  ;;  %v328_v39 = vld [vmem:[#allocation2 + $0x30] sm:$0xff]  ;;  %v325_v40 = vld [vmem:[#allocation2 + $0x18] sm:$0xff] }
 0x1c2   : > { %709 = vrot.lane.b32.xlu0 %v685_v42, %s2323_s8  ;;  %v687_v47 = vsub.f32 %v683_v45, %v2457_v4 }
 0x1c4   : > { %713 = vrot.lane.b32.xlu1 %v687_v47, %s2323_s8 }
 0x1c6   : > { %697 = vrot.lane.b32.xlu0 %v2486_v9, %s2321_s30  ;;  %v365_v9 = vld [vmem:[#allocation2 + $0x158] sm:$0xff] }
 0x1c8   : > { %715 = vrot.lane.b32.xlu1 %v688_v48, %s2323_s8 }
 0x1ca   : > { %699 = vrot.lane.b32.xlu0 %v2482_v8, %s2321_s30 }
 0x1cc   : > { %951 = vperm.xlu1 %2197, %v318_v50  }
 0x1ce   : > { %1015 = vperm.xlu0 %2199, %v318_v50  }
 0x1d0   : > { %2198 = vset.pattern.permute.xlu1 %v2325_v49 }
 0x1d1   : > { %1019 = vperm.xlu1 %2198, %v319_v51  }
 0x1d2   : > { %2200 = vset.pattern.permute.xlu0 %v2324_v46 }
 0x1d3   : > { %955 = vperm.xlu0 %2200, %v319_v51  }
 0x1d5   : > { %2201 = vset.pattern.permute.xlu1 %v2324_v46 }
 0x1d6   : > { %963 = vperm.xlu1 %2201, %v321_v52  }
 0x1d7   : > { %959 = vperm.xlu0 %2200, %v2522_v53  }
 0x1da   : > { %2202 = vset.pattern.permute.xlu1 %v2326_v54 }
 0x1db   : > { %1083 = vperm.xlu1 %2202, %v319_v51   ;;  %2204 = vset.pattern.permute.xlu0 %v2327_v55 }
 0x1dc   : > { %1147 = vperm.xlu0 %2204, %v319_v51  }
 0x1df   : > { %1079 = vperm.xlu1 %2202, %v318_v50  }
 0x1e0   : > { %2206 = vset.pattern.permute.xlu0 %v2326_v54 }
 0x1e1   : > { %1091 = vperm.xlu0 %2206, %v321_v52  }
 0x1e3   : > { %2203 = vset.pattern.permute.xlu1 %v2325_v49 }
 0x1e4   : > { %1027 = vperm.xlu1 %2203, %v321_v52  }
 0x1e5   : > { %2209 = vset.pattern.permute.xlu0 %v2327_v55 }
 0x1e6   : > { %1151 = vperm.xlu0 %2209, %v2522_v53  }
 0x1e8   : > { %1023 = vperm.xlu1 %2203, %v2522_v53  }
 0x1ea   : > { %2211 = vset.pattern.permute.xlu0 %v2328_v56 }
 0x1eb   : > { %995 = vperm.xlu0 %2211, %v319_v51  }
 0x1ec   : > { %2205 = vset.pattern.permute.xlu1 %v2327_v55 }
 0x1ed   : > { %1143 = vperm.xlu1 %2205, %v318_v50  }
 0x1ef   : > { %1003 = vperm.xlu0 %2211, %v321_v52  }
 0x1f1   : > { %2207 = vset.pattern.permute.xlu1 %v2326_v54 }
 0x1f2   : > { %1087 = vperm.xlu1 %2207, %v2522_v53  }
 0x1f3   : > { %999 = vperm.xlu0 %2211, %v2522_v53  }
 0x1f6   : > { %2208 = vset.pattern.permute.xlu1 %v2327_v55 }
 0x1f7   : > { %1155 = vperm.xlu1 %2208, %v321_v52   ;;  %2215 = vset.pattern.permute.xlu0 %v2329_v57 }
 0x1f8   : > { %1059 = vperm.xlu0 %2215, %v319_v51  }
 0x1fb   : > { %2210 = vset.pattern.permute.xlu1 %v2330_v58 }
 0x1fc   : > { %929 = vperm.xlu1 %2210, %v319_v51   ;;  %1055 = vperm.xlu0 %2215, %v318_v50  }
 0x200   : > { %924 = vperm.xlu1 %2210, %v318_v50   ;;  %1063 = vperm.xlu0 %2215, %v2522_v53  }
 0x204   : > { %2212 = vset.pattern.permute.xlu1 %v2328_v56  ;;  %2217 = vset.pattern.permute.xlu0 %v2331_v59 }
 0x205   : > { %991 = vperm.xlu1 %2212, %v318_v50   ;;  %1131 = vperm.xlu0 %2217, %v321_v52  }
 0x209   : > { %2213 = vset.pattern.permute.xlu1 %v2330_v58 }
 0x20a   : > { %939 = vperm.xlu1 %2213, %v321_v52  }
 0x20e   : > { %934 = vperm.xlu1 %2213, %v2522_v53  }
 0x212   : > { %2214 = vset.pattern.permute.xlu1 %v2331_v59 }
 0x213   : > { %1123 = vperm.xlu1 %2214, %v319_v51  }
 0x217   : > { %1119 = vperm.xlu1 %2214, %v318_v50  }
 0x21b   : > { %2216 = vset.pattern.permute.xlu1 %v2329_v57 }
 0x21c   : > { %1067 = vperm.xlu1 %2216, %v321_v52  }
 0x232   : > { %v712_v63 = vpop.permute.xlu1 %711 }
 0x233   : > { %v728_v16 = vsel %vm726_vm3, %v723_v12, %v712_v63 }
 0x234   : > { %v710_v6 = vpop.permute.xlu0 %709 }
 0x235   : > { %v2538_v8 = vsel %vm726_vm3, %v722_v62, %v710_v6 }
 0x236   : > { %2038 = vmatmul.mubr.msk.f32.vlgmr.msra.gmra.mxu1 %vm731_vm2, %v2538_v8  ;;  %v714_v14 = vpop.permute.xlu1 %713 }
 0x237   : > { %842 = vmatpush1.msra.mxu1 %v368_v7  ;;  %814 = vmatprep.mubr.f32.mxu1 %v2322_v35 }
 0x238   : > { %843 = vmatprep.subr.mxu1 %v365_v9  ;;  %v698_v13 = vpop.permute.xlu0 %697 }
 0x239   : > { %844 = vmatpush1.msra.mxu1 %v364_v10  ;;  %v724_v18 = vsel %vm721_vm1, %v2457_v4, %v698_v13 }
 0x23a   : > { %845 = vmatprep.subr.mxu1 %v361_v11  ;;  %2039 = vmatmul.mubr.msk.f32.gmra.mxu1 %vm731_vm2, %v728_v16  ;;  %v729_v23 = vsel %vm726_vm3, %v724_v18, %v714_v14  ;;  %v716_v26 = vpop.permute.xlu1 %715 }
 0x23b   : > { %846 = vmatpush1.msra.mxu1 %v360_v15  ;;  %820 = vmatprep.mubr.f32.mxu1 %v2322_v35 }
 0x23c   : > { %847 = vmatprep.subr.mxu1 %v357_v17  ;;  %v700_v21 = vpop.permute.xlu0 %699 }
 0x23d   : > { %848 = vmatpush1.msra.mxu1 %v356_v19  ;;  %v725_v25 = vsel %vm721_vm1, %v2454_v3, %v700_v21 }
 0x23e   : > { %849 = vmatprep.subr.mxu1 %v353_v20  ;;  %2040 = vmatmul.mubr.msk.f32.gmra.mxu1 %vm731_vm2, %v729_v23  ;;  %v730_v30 = vsel %vm726_vm3, %v725_v25, %v716_v26 }
 0x23f   : > { %850 = vmatpush1.msra.mxu1 %v352_v22  ;;  %826 = vmatprep.mubr.f32.mxu1 %v2322_v35 }
 0x240   : > { %851 = vmatprep.subr.mxu1 %v349_v24 }
 0x241   : > { %852 = vmatpush1.msra.mxu1 %v348_v27 }
 0x242   : > { %853 = vmatprep.subr.mxu1 %v345_v28  ;;  %2041 = vmatmul.mubr.msk.f32.gmra.mxu1 %vm731_vm2, %v730_v30 }
 0x243   : > { %854 = vmatpush1.msra.mxu1 %v344_v29  ;;  %897 = vmatprep.mubr.f32.mxu1 %v2322_v35 }
 0x244   : > { %855 = vmatprep.subr.mxu1 %v341_v31 }
 0x245   : > { %856 = vmatpush1.msra.mxu1 %v340_v32 }
 0x246   : > { %857 = vmatprep.subr.mxu1 %v337_v33 }
 0x247   : > { %858 = vmatpush1.msra.mxu1 %v336_v34  ;;  %v2568_v42 = vpop.permute.xlu1 %951 }
 0x248   : > { %859 = vmatprep.subr.mxu1 %v333_v36 }
 0x249   : > { %860 = vmatpush1.msra.mxu1 %v332_v37  ;;  %v2574_v45 = vpop.permute.xlu0 %1015 }
 0x24a   : > { %861 = vmatprep.subr.mxu1 %v329_v38 }
 0x24b   : > { %862 = vmatpush1.msra.mxu1 %v328_v39 }
 0x24c   : > { %863 = vmatprep.subr.mxu1 %v325_v40  ;;  %v2570_v43 = vpop.permute.xlu1 %1019 }
 0x24d   : > { %864 = vmatpush1.msra.mxu1 %v324_v41 }
 0x24e   : > { %2042 = vmatmul.mubr.msk.f32.vlgmr.msra.gmra.mxu1 %vm731_vm2, %v2538_v8  ;;  %v2584_v49 = vpop.permute.xlu0 %955 }
 0x24f   : > { %903 = vmatprep.mubr.f32.mxu1 %v2322_v35 }
 0x251   : > { %v2572_v44 = vpop.permute.xlu1 %963 }
 0x252   : > { %2043 = vmatmul.mubr.msk.f32.gmra.mxu1 %vm731_vm2, %v728_v16  ;;  %v2608_v61 = vpop.permute.xlu0 %959 }
 0x253   : > { %909 = vmatprep.mubr.f32.mxu1 %v2322_v35 }
 0x256   : > { %2044 = vmatmul.mubr.msk.f32.gmra.mxu1 %vm731_vm2, %v729_v23  ;;  %v2576_v46 = vpop.permute.xlu1 %1083 }
 0x257   : > { %915 = vmatprep.mubr.f32.mxu1 %v2322_v35  ;;  %v2630_v11 = vpop.permute.xlu0 %1147 }
 0x25a   : > { %2045 = vmatmul.mubr.msk.f32.gmra.mxu1 %vm731_vm2, %v730_v30  ;;  %v2589_v51 = vpop.permute.xlu1 %1079 }
 0x25b   : > { %2135 = vmatprep.mubr.msk.f32.mxu1 %vm374_vm0, %v2448_v2 }
 0x25f   : > { %v2603_v59 = vpop.permute.xlu1 %1027 }
 0x263   : > { %v2618_v7 = vpop.permute.xlu1 %1023 }
 0x268   : > { %v2633_v14 = vpop.permute.xlu1 %1143 }
 0x26d   : > { %v2647_v19 = vpop.permute.xlu1 %1087 }
 0x272   : > { %v2671_v29 = vpop.permute.xlu1 %1155 }
 0x273   : > { %2990 = vst [vmem:[#allocation9_spill] sm:$0xff] %v2671_v29 }
 0x277   : > { %v2676_v31 = vpop.permute.xlu1 %929 }
 0x278   : > { %2991 = vst [vmem:[#allocation10_spill] sm:$0xff] %v2676_v31 }
 0x27b   : > { %v2678_v32 = vpop.permute.xlu1 %924 }
 0x27c   : > { %2992 = vst [vmem:[#allocation11_spill] sm:$0xff] %v2678_v32 }
 0x280   : > { %v2680_v33 = vpop.permute.xlu1 %991 }
 0x285   : > { %v2684_v36 = vpop.permute.xlu1 %939 }
 0x289   : > { %v2688_v38 = vpop.permute.xlu1 %934 }
 0x28e   : > { %v2694_v41 = vpop.permute.xlu1 %1123 }
 0x2f6   : > { %v2578_v47 = vpop.f32.mrf.mxu1 }
 0x2f7   : > { %v966_v35 = vmul.f32 %v2568_v42, %v2578_v47 }
 0x2f8   : > { %v2582_v48 = vpop.f32.mrf.mxu1 }
 0x2f9   : > { %v1030_v50 = vmul.f32 %v2574_v45, %v2582_v48  ;;  %974 = vrot.lane.b32.xlu1 %v966_v35, %s2323_s8 }
 0x2fa   : > { %v2591_v52 = vpop.f32.mrf.mxu1 }
 0x2fb   : > { %v967_v54 = vmul.f32 %v2584_v49, %v2591_v52  ;;  %1038 = vrot.lane.b32.xlu0 %v1030_v50, %s2323_s8  ;;  %v2698_v50 = vpop.permute.xlu1 %1119 }
 0x2fc   : > { %v2596_v56 = vpop.f32.mrf.mxu1 }
 0x2fd   : > { %976 = vrot.lane.b32.xlu1 %v967_v54, %s2323_s8  ;;  %v1031_v58 = vmul.f32 %v2570_v43, %v2596_v56  ;;  %v942_v54 = vmul.f32 %v2678_v32, %v2578_v47  ;;  %v1006_v47 = vmul.f32 %v2680_v33, %v2582_v48 }
 0x2fe   : > { %v2599_v57 = vpop.f32.mrf.mxu1 }
 0x2ff   : > { %v968_v63 = vmul.f32 %v2608_v61, %v2599_v57 }
 0x300   : > { %v2605_v60 = vpop.f32.mrf.mxu1 }
 0x301   : > { %1040 = vrot.lane.b32.xlu1 %v1031_v58, %s2323_s8  ;;  %v1032_v8 = vmul.f32 %v2618_v7, %v2605_v60 }
 0x302   : > { %v2610_v62 = vpop.f32.mrf.mxu1 }
 0x303   : > { %v969_v6 = vmul.f32 %v2572_v44, %v2610_v62 }
 0x304   : > { %v2622_v9 = vpop.f32.mrf.mxu1 }
 0x305   : > { %980 = vrot.lane.b32.xlu0 %v969_v6, %s2323_s8  ;;  %978 = vrot.lane.b32.xlu1 %v968_v63, %s2323_s8  ;;  %v1033_v10 = vmul.f32 %v2603_v59, %v2622_v9  ;;  %v2704_v63 = vpop.permute.xlu1 %1067  ;;  %v370_v6 = vld [vmem:[%s2978_s4] sm:$0xff] }
 0x309   : > { %1127 = vperm.xlu0 %2217, %v2522_v53   ;;  %1042 = vrot.lane.b32.xlu1 %v1032_v8, %s2323_s8  ;;  %v943_v8 = vmul.f32 %v2676_v31, %v2591_v52  ;;  %v944_v31 = vmul.f32 %v2688_v38, %v2599_v57 }
 0x30d   : > { %1044 = vrot.lane.b32.xlu1 %v1033_v10, %s2323_s8  ;;  %2218 = vset.pattern.permute.xlu0 %v2327_v55  ;;  %v2642_v55 = vpop.permute.xlu0 %1091  ;;  %v946_v10 = vadd.f32 %v942_v54, %v370_v6 }
 0x30e   : > { %v899_v12 = vpop.f32.mrf.mxu1 }
 0x30f   : > { %v1094_v13 = vmul.f32 %v2589_v51, %v899_v12 }
 0x310   : > { %v2635_v15 = vpop.f32.mrf.mxu1 }
 0x311   : > { %v1158_v53 = vmul.f32 %v2633_v14, %v2635_v15  ;;  %1102 = vrot.lane.b32.xlu1 %v1094_v13, %s2323_s8  ;;  %v2659_v24 = vpop.permute.xlu0 %1151 }
 0x312   : > { %v905_v16 = vpop.f32.mrf.mxu1  ;;  %2989 = vst [vmem:[#allocation8_spill] sm:$0xff] %v2659_v24 }
 0x313   : > { %v1095_v17 = vmul.f32 %v2576_v46, %v905_v16  ;;  %1166 = vrot.lane.b32.xlu0 %v1158_v53, %s2323_s8 }
 0x314   : > { %v2644_v18 = vpop.f32.mrf.mxu1 }
 0x315   : > { %1104 = vrot.lane.b32.xlu1 %v1095_v17, %s2323_s8  ;;  %v1159_v21 = vmul.f32 %v2630_v11, %v2644_v18  ;;  %v2682_v34 = vpop.permute.xlu0 %995  ;;  %v371_v17 = vld [vmem:[%s2978_s4 + $0x8] sm:$0xff] }
 0x316   : > { %v2649_v20 = vpop.f32.mrf.mxu1  ;;  %v1007_v32 = vmul.f32 %v2682_v34, %v2596_v56  ;;  %v373_v56 = vld [vmem:[%s2978_s4 + $0x18] sm:$0xff] }
 0x317   : > { %v1096_v22 = vmul.f32 %v2647_v19, %v2649_v20 }
 0x318   : > { %v2655_v23 = vpop.f32.mrf.mxu1 }
 0x319   : > { %1106 = vrot.lane.b32.xlu0 %v1096_v22, %s2323_s8  ;;  %1168 = vrot.lane.b32.xlu1 %v1159_v21, %s2323_s8  ;;  %v1160_v26 = vmul.f32 %v2659_v24, %v2655_v23  ;;  %v2686_v37 = vpop.permute.xlu0 %1003  ;;  %v945_v24 = vmul.f32 %v2684_v36, %v2610_v62 }
 0x31a   : > { %v2661_v25 = vpop.f32.mrf.mxu1 }
 0x31b   : > { %v1097_v27 = vmul.f32 %v2642_v55, %v2661_v25 }
 0x31c   : > { %v2667_v28 = vpop.f32.mrf.mxu1 }
 0x31d   : > { %1170 = vrot.lane.b32.xlu0 %v1160_v26, %s2323_s8  ;;  %1108 = vrot.lane.b32.xlu1 %v1097_v27, %s2323_s8  ;;  %v1161_v30 = vmul.f32 %v2671_v29, %v2667_v28  ;;  %v2690_v39 = vpop.permute.xlu0 %999  ;;  %v947_v26 = vadd.f32 %v943_v8, %v371_v17  ;;  %v372_v8 = vld [vmem:[%s2978_s4 + $0x10] sm:$0xff] }
 0x31e   : > { %v948_v17 = vadd.f32 %v944_v31, %v372_v8  ;;  %v1008_v62 = vmul.f32 %v2690_v39, %v2605_v60 }
 0x321   : > { %1172 = vrot.lane.b32.xlu1 %v1161_v30, %s2323_s8  ;;  %v2692_v40 = vpop.permute.xlu0 %1059 }
 0x325   : > { %v2696_v35 = vpop.permute.xlu0 %1055 }
 0x326   : > { %v1070_v52 = vmul.f32 %v2696_v35, %v899_v12  ;;  %v1071_v12 = vmul.f32 %v2692_v40, %v905_v16 }
 0x329   : > { %v2702_v58 = vpop.permute.xlu0 %1063 }
 0x32a   : > { %v1072_v16 = vmul.f32 %v2702_v58, %v2649_v20  ;;  %v1135_v20 = vmul.f32 %v2694_v41, %v2644_v18 }
 0x32d   : > { %v2711_v13 = vpop.permute.xlu0 %1131 }
 0x36b   : > { %v975_v53 = vpop.permute.xlu1 %974 }
 0x36c   : > { %v986_v21 = vadd.f32 %v975_v53, %v946_v10 }
 0x36d   : > { %v1039_v27 = vpop.permute.xlu0 %1038 }
 0x36e   : > { %v1010_v22 = vadd.f32 %v1006_v47, %v986_v21  ;;  %v949_v47 = vadd.f32 %v945_v24, %v373_v56 }
 0x36f   : > { %v977_v30 = vpop.permute.xlu1 %976 }
 0x370   : > { %v1050_v54 = vadd.f32 %v1039_v27, %v1010_v22  ;;  %v987_v6 = vadd.f32 %v977_v30, %v947_v26 }
 0x372   : > { %v1011_v29 = vadd.f32 %v1007_v32, %v987_v6  ;;  %v1074_v48 = vadd.f32 %v1070_v52, %v1050_v54  ;;  %v1009_v32 = vmul.f32 %v2686_v37, %v2622_v9  ;;  %v1073_v6 = vmul.f32 %v2704_v63, %v2661_v25 }
 0x373   : > { %v1041_v10 = vpop.permute.xlu1 %1040  ;;  %v1134_v9 = vmul.f32 %v2698_v50, %v2635_v15 }
 0x374   : > { %v1051_v53 = vadd.f32 %v1041_v10, %v1011_v29 }
 0x376   : > { %v1075_v57 = vadd.f32 %v1071_v12, %v1051_v53 }
 0x377   : > { %v979_v21 = vpop.permute.xlu1 %978  ;;  %v981_v22 = vpop.permute.xlu0 %980 }
 0x378   : > { %v988_v26 = vadd.f32 %v979_v21, %v948_v17  ;;  %v989_v27 = vadd.f32 %v981_v22, %v949_v47 }
 0x37a   : > { %v1012_v30 = vadd.f32 %v1008_v62, %v988_v26  ;;  %v1013_v52 = vadd.f32 %v1009_v32, %v989_v27 }
 0x37b   : > { %v1043_v54 = vpop.permute.xlu1 %1042 }
 0x37c   : > { %v1052_v29 = vadd.f32 %v1043_v54, %v1012_v30 }
 0x37e   : > { %v1076_v31 = vadd.f32 %v1072_v16, %v1052_v29  ;;  %v1137_v16 = vmul.f32 %v2711_v13, %v2667_v28 }
 0x37f   : > { %v1045_v24 = vpop.permute.xlu1 %1044 }
 0x380   : > { %v1053_v10 = vadd.f32 %v1045_v24, %v1013_v52 }
 0x382   : > { %v1077_v8 = vadd.f32 %v1073_v6, %v1053_v10 }
 0x383   : > { %v1103_v60 = vpop.permute.xlu1 %1102 }
 0x384   : > { %v1114_v56 = vadd.f32 %v1103_v60, %v1074_v48  ;;  %v2742_v12 = vpop.permute.xlu0 %1127 }
 0x385   : > { %v1136_v30 = vmul.f32 %v2742_v12, %v2655_v23 }
 0x386   : > { %v1138_v53 = vadd.f32 %v1134_v9, %v1114_v56 }
 0x387   : > { %v1105_v17 = vpop.permute.xlu1 %1104 }
 0x388   : > { %v1115_v47 = vadd.f32 %v1105_v17, %v1075_v57  ;;  %v1167_v21 = vpop.permute.xlu0 %1166 }
 0x389   : > { %v1178_v22 = vadd.f32 %v1167_v21, %v1138_v53 }
 0x38a   : > { %v1139_v62 = vadd.f32 %v1135_v20, %v1115_v47 }
 0x38b   : > { %v2046_v32 = vmul.f32 -1.442695, %v1178_v22  ;;  %v1169_v25 = vpop.permute.xlu1 %1168 }
 0x38c   : > { %v1179_v26 = vadd.f32 %v1169_v25, %v1139_v62  ;;  %v1107_v27 = vpop.permute.xlu0 %1106 }
 0x38d   : > { %2219 = vpow2.f32 %v2046_v32  ;;  %v1116_v15 = vadd.f32 %v1107_v27, %v1076_v31 }
 0x38e   : > { %v2047_v48 = vmul.f32 -1.442695, %v1179_v26 }
 0x38f   : > { %v1109_v52 = vpop.permute.xlu1 %1108  ;;  %v1140_v54 = vadd.f32 %v1136_v30, %v1116_v15 }
 0x390   : > { %2221 = vpow2.f32 %v2047_v48  ;;  %v1117_v18 = vadd.f32 %v1109_v52, %v1077_v8  ;;  %v1171_v57 = vpop.permute.xlu0 %1170  ;;  %v1256_v52 = vld [vmem:[#allocation4 + $0xf0] sm:$0xff] }
 0x391   : > { %v1180_v29 = vadd.f32 %v1171_v57, %v1140_v54  ;;  %v1255_v54 = vld [vmem:[#allocation4 + $0xe8] sm:$0xff]  ;;  %v1252_v57 = vld [vmem:[#allocation4 + $0xd0] sm:$0xff] }
 0x392   : > { %v1141_v24 = vadd.f32 %v1137_v16, %v1117_v18  ;;  %v1254_v16 = vld [vmem:[#allocation4 + $0xe0] sm:$0xff] }
 0x393   : > { %v2048_v6 = vmul.f32 -1.442695, %v1180_v29  ;;  %v1173_v10 = vpop.permute.xlu1 %1172 }
 0x394   : > { %v1181_v60 = vadd.f32 %v1173_v10, %v1141_v24  ;;  %v1251_v24 = vld [vmem:[#allocation4 + $0xc8] sm:$0xff]  ;;  %v1249_v10 = vld [vmem:[#allocation4 + $0xb8] sm:$0xff] }
 0x395   : > { %2223 = vpow2.f32 %v2048_v6  ;;  %v1250_v6 = vld [vmem:[#allocation4 + $0xc0] sm:$0xff] }
 0x396   : > { %v2049_v9 = vmul.f32 -1.442695, %v1181_v60  ;;  %v1248_v60 = vld [vmem:[#allocation4 + $0xb0] sm:$0xff] }
 0x398   : > { %2225 = vpow2.f32 %v2049_v9  ;;  %v1247_v9 = vld [vmem:[#allocation4 + $0xa8] sm:$0xff] }
 0x39a   : > { %v2220_v23 = vpop.eup %2219 }
 0x39b   : > { %v1194_v56 = vadd.f32 1.0, %v2220_v23  ;;  %v1246_v23 = vld [vmem:[#allocation4 + $0xa0] sm:$0xff] }
 0x39d   : > { %v2222_v31 = vpop.eup %2221  ;;  %2227 = vrcp.f32 %v1194_v56  ;;  %v1245_v56 = vld [vmem:[#allocation4 + $0x98] sm:$0xff] }
 0x39e   : > { %v1195_v53 = vadd.f32 1.0, %v2222_v31  ;;  %v1244_v31 = vld [vmem:[#allocation4 + $0x90] sm:$0xff] }
 0x3a0   : > { %2229 = vrcp.f32 %v1195_v53  ;;  %v1243_v53 = vld [vmem:[#allocation4 + $0x88] sm:$0xff] }
 0x3a2   : > { %v2224_v17 = vpop.eup %2223 }
 0x3a3   : > { %v1196_v20 = vadd.f32 1.0, %v2224_v17  ;;  %v1242_v17 = vld [vmem:[#allocation4 + $0x80] sm:$0xff] }
 0x3a5   : > { %v2226_v28 = vpop.eup %2225  ;;  %2231 = vrcp.f32 %v1196_v20  ;;  %v1241_v20 = vld [vmem:[#allocation4 + $0x78] sm:$0xff] }
 0x3a6   : > { %v1197_v8 = vadd.f32 1.0, %v2226_v28  ;;  %v1240_v28 = vld [vmem:[#allocation4 + $0x70] sm:$0xff] }
 0x3a8   : > { %2233 = vrcp.f32 %v1197_v8  ;;  %v1238_v8 = vld [vmem:[#allocation4 + $0x60] sm:$0xff] }
 0x3aa   : > { %v2750_v47 = vpop.eup %2227 }
 0x3ab   : > { %1210 = vrot.lane.b32.xlu0 %v2750_v47, %s2321_s30 }
 0x3ad   : > { %v2754_v21 = vpop.eup %2229 }
 0x3ae   : > { %1212 = vrot.lane.b32.xlu1 %v2754_v21, %s2321_s30 }
 0x3b2   : > { %v2758_v22 = vpop.eup %2231 }
 0x3b3   : > { %1214 = vrot.lane.b32.xlu0 %v2758_v22, %s2321_s30 }
 0x3b5   : > { %v2762_v62 = vpop.eup %2233 }
 0x3b6   : > { %1216 = vrot.lane.b32.xlu1 %v2762_v62, %s2321_s30 }
 0x41d   : > { %v1211_v32 = vpop.permute.xlu0 %1210 }
 0x41e   : > { %v2773_v27 = vsel %vm721_vm1, %v2443_v1, %v1211_v32  ;;  %v1237_v32 = vld [vmem:[#allocation4 + $0x58] sm:$0xff] }
 0x420   : > { %v1213_v25 = vpop.permute.xlu1 %1212 }
 0x421   : > { %v2768_v26 = vsel %vm721_vm1, %v2440_v0, %v1213_v25  ;;  %v1236_v25 = vld [vmem:[#allocation4 + $0x50] sm:$0xff] }
 0x422   : > { %2124 = vmatprep.subr.mxu0 %v2768_v26 }
 0x423   : > { %2125 = vmatpush3.msra.mxu0 %v2768_v26 }
 0x424   : > { %2126 = vmatprep.subr.mxu0 %v2773_v27 }
 0x425   : > { %2127 = vmatpush3.msra.mxu0 %v2773_v27  ;;  %v1215_v0 = vpop.permute.xlu0 %1214 }
 0x426   : > { %2129 = vmatmul.mubr.msk.f32.vlgmr.msra.gmra.mxu0 %vm374_vm0, %v2463_v5  ;;  %v2789_v1 = vsel %vm721_vm1, %v2457_v4, %v1215_v0  ;;  %v1257_v4 = vld [vmem:[#allocation4 + $0xf8] sm:$0xff]  ;;  %v1235_v0 = vld [vmem:[#allocation4 + $0x48] sm:$0xff] }
 0x427   : > { %2142 = vmatprep.mubr.msk.f32.mxu0 %vm374_vm0, %v2448_v2 }
 0x428   : > { %v1217_v30 = vpop.permute.xlu1 %1216 }
 0x429   : > { %v2784_v15 = vsel %vm721_vm1, %v2454_v3, %v1217_v30  ;;  %v1234_v30 = vld [vmem:[#allocation4 + $0x40] sm:$0xff] }
 0x42a   : > { %2131 = vmatprep.subr.mxu1 %v2784_v15 }
 0x42b   : > { %2132 = vmatpush3.msra.mxu1 %v2784_v15 }
 0x42c   : > { %2133 = vmatprep.subr.mxu1 %v2789_v1 }
 0x42d   : > { %2134 = vmatpush3.msra.mxu1 %v2789_v1 }
 0x42e   : > { %2136 = vmatmul.mubr.msk.f32.vlgmr.msra.gmra.mxu1 %vm374_vm0, %v2463_v5 }
 0x42f   : > { %2149 = vmatprep.mubr.msk.f32.mxu1 %vm374_vm0, %v2448_v2  ;;  %v1253_v2 = vld [vmem:[#allocation4 + $0xd8] sm:$0xff] }
 0x4e6   : > { %v2130_v3 = vpop.f32.mrf.mxu0 }
 0x4e7   : > { %1592 = vrot.lane.b32.xlu0 %v2130_v3, %s2323_s8  ;;  %2138 = vmatprep.subr.mxu0 %v2130_v3 }
 0x4e8   : > { %v1344_v48 = vpop.f32.mrf.mxu0  ;;  %2139 = vmatpush3.msra.mxu0 %v2130_v3  ;;  %v1233_v3 = vld [vmem:[#allocation4 + $0x38] sm:$0xff] }
 0x4e9   : > { %1590 = vrot.lane.b32.xlu1 %v1344_v48, %s2323_s8  ;;  %2140 = vmatprep.subr.mxu0 %v1344_v48 }
 0x4ea   : > { %2141 = vmatpush3.msra.mxu0 %v1344_v48  ;;  %v1232_v48 = vld [vmem:[#allocation4 + $0x30] sm:$0xff] }
 0x4eb   : > { %2143 = vmatmul.mubr.msk.f32.vlgmr.msra.gmra.mxu0 %vm374_vm0, %v2463_v5  ;;  %1618 = vmatprep.subr.mxu0 %v1257_v4  ;;  %v1231_v4 = vld [vmem:[#allocation4 + $0x28] sm:$0xff] }
 0x4ec   : > { %1619 = vmatpush1.msra.mxu0 %v1256_v52  ;;  %v1230_v52 = vld [vmem:[#allocation4 + $0x20] sm:$0xff] }
 0x4ed   : > { %1620 = vmatprep.subr.mxu0 %v1255_v54  ;;  %v1229_v54 = vld [vmem:[#allocation4 + $0x18] sm:$0xff] }
 0x4ee   : > { %v2137_v18 = vpop.f32.mrf.mxu1  ;;  %1621 = vmatpush1.msra.mxu0 %v1254_v16  ;;  %v1228_v16 = vld [vmem:[#allocation4 + $0x10] sm:$0xff] }
 0x4ef   : > { %1596 = vrot.lane.b32.xlu0 %v2137_v18, %s2323_s8  ;;  %2145 = vmatprep.subr.mxu1 %v2137_v18 }
 0x4f0   : > { %v1419_v29 = vpop.f32.mrf.mxu1  ;;  %2146 = vmatpush3.msra.mxu1 %v2137_v18  ;;  %1622 = vmatprep.subr.mxu0 %v1253_v2  ;;  %v1227_v2 = vld [vmem:[#allocation4 + $0x8] sm:$0xff]  ;;  %v1226_v18 = vld [vmem:[#allocation4] sm:$0xff] }
 0x4f1   : > { %1594 = vrot.lane.b32.xlu1 %v1419_v29, %s2323_s8  ;;  %2147 = vmatprep.subr.mxu1 %v1419_v29 }
 0x4f2   : > { %2148 = vmatpush3.msra.mxu1 %v1419_v29  ;;  %1623 = vmatpush1.msra.mxu0 %v1252_v57  ;;  %v1273_v57 = vld [vmem:[#allocation4 + $0x178] sm:$0xff]  ;;  %v1272_v29 = vld [vmem:[#allocation4 + $0x170] sm:$0xff] }
 0x4f3   : > { %2150 = vmatmul.mubr.msk.f32.vlgmr.msra.gmra.mxu1 %vm374_vm0, %v2463_v5  ;;  %1624 = vmatprep.subr.mxu0 %v1251_v24  ;;  %v1239_v5 = vld [vmem:[#allocation4 + $0x68] sm:$0xff] }
 0x4f4   : > { %1625 = vmatpush1.msra.mxu0 %v1250_v6  ;;  %v1271_v24 = vld [vmem:[#allocation4 + $0x168] sm:$0xff]  ;;  %v1270_v6 = vld [vmem:[#allocation4 + $0x160] sm:$0xff] }
 0x4f5   : > { %1626 = vmatprep.subr.mxu0 %v1249_v10  ;;  %v1269_v10 = vld [vmem:[#allocation4 + $0x158] sm:$0xff] }
 0x4f6   : > { %1627 = vmatpush1.msra.mxu0 %v1248_v60  ;;  %v1268_v60 = vld [vmem:[#allocation4 + $0x150] sm:$0xff] }
 0x4f7   : > { %1628 = vmatprep.subr.mxu0 %v1247_v9  ;;  %v1267_v9 = vld [vmem:[#allocation4 + $0x148] sm:$0xff] }
 0x4f8   : > { %1629 = vmatpush1.msra.mxu0 %v1246_v23  ;;  %v1266_v23 = vld [vmem:[#allocation4 + $0x140] sm:$0xff] }
 0x4f9   : > { %1630 = vmatprep.subr.mxu0 %v1245_v56  ;;  %v1265_v56 = vld [vmem:[#allocation4 + $0x138] sm:$0xff] }
 0x4fa   : > { %1631 = vmatpush1.msra.mxu0 %v1244_v31  ;;  %v1264_v31 = vld [vmem:[#allocation4 + $0x130] sm:$0xff] }
 0x4fb   : > { %1632 = vmatprep.subr.mxu0 %v1243_v53  ;;  %v1263_v53 = vld [vmem:[#allocation4 + $0x128] sm:$0xff] }
 0x4fc   : > { %1633 = vmatpush1.msra.mxu0 %v1242_v17  ;;  %v1262_v17 = vld [vmem:[#allocation4 + $0x120] sm:$0xff] }
 0x4fd   : > { %1634 = vmatprep.subr.mxu0 %v1241_v20  ;;  %v1261_v20 = vld [vmem:[#allocation4 + $0x118] sm:$0xff] }
 0x4fe   : > { %1635 = vmatpush1.msra.mxu0 %v1240_v28  ;;  %v1260_v28 = vld [vmem:[#allocation4 + $0x110] sm:$0xff] }
 0x4ff   : > { %1636 = vmatprep.subr.mxu0 %v1239_v5  ;;  %v1259_v5 = vld [vmem:[#allocation4 + $0x108] sm:$0xff] }
 0x500   : > { %1637 = vmatpush1.msra.mxu0 %v1238_v8  ;;  %v1258_v8 = vld [vmem:[#allocation4 + $0x100] sm:$0xff] }
 0x501   : > { %1638 = vmatprep.subr.mxu0 %v1237_v32 }
 0x502   : > { %1639 = vmatpush1.msra.mxu0 %v1236_v25 }
 0x503   : > { %1640 = vmatprep.subr.mxu0 %v1235_v0 }
 0x504   : > { %1641 = vmatpush1.msra.mxu0 %v1234_v30 }
 0x505   : > { %1642 = vmatprep.subr.mxu0 %v1233_v3 }
 0x506   : > { %1643 = vmatpush1.msra.mxu0 %v1232_v48 }
 0x507   : > { %1644 = vmatprep.subr.mxu0 %v1231_v4 }
 0x508   : > { %1645 = vmatpush1.msra.mxu0 %v1230_v52 }
 0x509   : > { %1646 = vmatprep.subr.mxu0 %v1229_v54 }
 0x50a   : > { %1647 = vmatpush1.msra.mxu0 %v1228_v16 }
 0x50b   : > { %1648 = vmatprep.subr.mxu0 %v1227_v2 }
 0x50c   : > { %1649 = vmatpush1.msra.mxu0 %v1226_v18 }
 0x50d   : > { %1666 = vmatprep.subr.mxu0 %v1273_v57 }
 0x50e   : > { %1667 = vmatpush2.msra.mxu0 %v1272_v29 }
 0x50f   : > { %1668 = vmatprep.subr.mxu0 %v1271_v24 }
 0x510   : > { %1669 = vmatpush2.msra.mxu0 %v1270_v6 }
 0x511   : > { %1670 = vmatprep.subr.mxu0 %v1269_v10 }
 0x512   : > { %1671 = vmatpush2.msra.mxu0 %v1268_v60 }
 0x513   : > { %1672 = vmatprep.subr.mxu0 %v1267_v9 }
 0x514   : > { %1673 = vmatpush2.msra.mxu0 %v1266_v23 }
 0x515   : > { %1674 = vmatprep.subr.mxu0 %v1265_v56 }
 0x516   : > { %1675 = vmatpush2.msra.mxu0 %v1264_v31 }
 0x517   : > { %1676 = vmatprep.subr.mxu0 %v1263_v53 }
 0x518   : > { %1677 = vmatpush2.msra.mxu0 %v1262_v17 }
 0x519   : > { %1678 = vmatprep.subr.mxu0 %v1261_v20 }
 0x51a   : > { %1679 = vmatpush2.msra.mxu0 %v1260_v28 }
 0x51b   : > { %1680 = vmatprep.subr.mxu0 %v1259_v5 }
 0x51c   : > { %1681 = vmatpush2.msra.mxu0 %v1258_v8 }
 0x559   : > { %v1593_v54 = vpop.permute.xlu0 %1592 }
 0x55a   : > { %v1603_v29 = vsel %vm726_vm3, %v2768_v26, %v1593_v54 }
 0x55b   : > { %v1591_v3 = vpop.permute.xlu1 %1590 }
 0x55c   : > { %v1602_v4 = vsel %vm726_vm3, %v2773_v27, %v1591_v3  ;;  %v2995_v3 = vld [vmem:[#allocation11_spill] sm:$0xff] }
 0x561   : > { %v1597_v60 = vpop.permute.xlu0 %1596 }
 0x562   : > { %v1605_v9 = vsel %vm726_vm3, %v2784_v15, %v1597_v60 }
 0x563   : > { %v1595_v24 = vpop.permute.xlu1 %1594 }
 0x564   : > { %v1604_v10 = vsel %vm726_vm3, %v2789_v1, %v1595_v24 }
 0x5ab   : > { %v2144_v32 = vpop.f32.mrf.mxu0 }
 0x5ac   : > { %v1579_v0 = vmul.f32 2.0, %v2144_v32 }
 0x5ad   : > { %v1494_v25 = vpop.f32.mrf.mxu0 }
 0x5ae   : > { %v1578_v30 = vmul.f32 2.0, %v1494_v25  ;;  %v1583_v52 = vsub.f32 %v1579_v0, %v2768_v26  ;;  %v2994_v25 = vld [vmem:[#allocation8_spill] sm:$0xff] }
 0x5af   : > { %v2243_v0 = vld [vmem:[%s2437_s25] sm:$0xff] }
 0x5b0   : > { %v1582_v48 = vsub.f32 %v1578_v30, %v2773_v27  ;;  %v2246_v30 = vld [vmem:[%s2437_s25 + $0x18] sm:$0xff] }
 0x5b2   : > { %2058 = vmatprep.mubr.msk.f32.mxu0 %vm726_vm3, %v1582_v48 }
 0x5b3   : > { %v2151_v16 = vpop.f32.mrf.mxu1  ;;  %1683 = vmatmul.mubr.f32.vlgmr.msra.gmra.mxu0 %v1602_v4  ;;  %v1274_v4 = vld [vmem:[%s2980_s6] sm:$0xff] }
 0x5b4   : > { %2059 = vmatprep.mubr.msk.f32.mxu0 %vm726_vm3, %v1583_v52  ;;  %v1581_v18 = vmul.f32 2.0, %v2151_v16 }
 0x5b5   : > { %v1569_v2 = vpop.f32.mrf.mxu1 }
 0x5b6   : > { %v1580_v57 = vmul.f32 2.0, %v1569_v2  ;;  %v1585_v27 = vsub.f32 %v1581_v18, %v2784_v15 }
 0x5b7   : > { %1689 = vmatmul.mubr.f32.gmra.mxu0 %v1603_v29 }
 0x5b8   : > { %v1584_v6 = vsub.f32 %v1580_v57, %v2789_v1 }
 0x5ba   : > { %2060 = vmatprep.mubr.msk.f32.mxu0 %vm726_vm3, %v1584_v6 }
 0x5bb   : > { %1695 = vmatmul.mubr.f32.gmra.mxu0 %v1604_v10 }
 0x5bc   : > { %2061 = vmatprep.mubr.msk.f32.mxu0 %vm726_vm3, %v1585_v27 }
 0x5bf   : > { %1701 = vmatmul.mubr.f32.gmra.mxu0 %v1605_v9 }
 0x673   : > { %v2822_v26 = vpop.f32.mrf.mxu0 }
 0x674   : > { %v1739_v23 = vmul.f32 %v2822_v26, %v2680_v33  ;;  %v1715_v56 = vmul.f32 %v2822_v26, %v2568_v42  ;;  %v1763_v15 = vmul.f32 %v2822_v26, %v2574_v45  ;;  %v1707_v48 = vmul.f32 %v2822_v26, %v2995_v3  ;;  %v1276_v26 = vld [vmem:[%s2980_s6 + $0x10] sm:$0xff] }
 0x675   : > { %v2828_v31 = vpop.f32.mrf.mxu0 }
 0x676   : > { %1747 = vrot.lane.b32.xlu0 %v1739_v23, %s2323_s8  ;;  %1723 = vrot.lane.b32.xlu1 %v1715_v56, %s2332_s29  ;;  %v1795_v53 = vmul.f32 %v2828_v31, %v2589_v51  ;;  %v1819_v33 = vmul.f32 %v2828_v31, %v2698_v50  ;;  %v1843_v45 = vmul.f32 %v2828_v31, %v2633_v14 }
 0x677   : > { %v2832_v1 = vpop.f32.mrf.mxu0  ;;  %v1711_v52 = vadd.f32 %v1707_v48, %v1274_v4  ;;  %v1787_v24 = vmul.f32 %v2828_v31, %v2696_v35  ;;  %v2996_v35 = vld [vmem:[#allocation10_spill] sm:$0xff] }
 0x678   : > { %v1716_v50 = vmul.f32 %v2832_v1, %v2584_v49  ;;  %v1740_v14 = vmul.f32 %v2832_v1, %v2682_v34  ;;  %v1764_v49 = vmul.f32 %v2832_v1, %v2570_v43  ;;  %v1708_v31 = vmul.f32 %v2832_v1, %v2996_v35 }
 0x679   : > { %v2838_v17 = vpop.f32.mrf.mxu0 }
 0x67a   : > { %1771 = vrot.lane.b32.xlu0 %v1763_v15, %s2321_s30  ;;  %1803 = vrot.lane.b32.xlu1 %v1795_v53, %s2332_s29  ;;  %v1796_v34 = vmul.f32 %v2838_v17, %v2576_v46  ;;  %v1820_v43 = vmul.f32 %v2838_v17, %v2694_v41 }
 0x67b   : > { %v2842_v42 = vpop.f32.mrf.mxu0 }
 0x67c   : > { %v1717_v20 = vmul.f32 %v2842_v42, %v2608_v61  ;;  %v1741_v51 = vmul.f32 %v2842_v42, %v2690_v39  ;;  %v1765_v61 = vmul.f32 %v2842_v42, %v2618_v7  ;;  %v1709_v60 = vmul.f32 %v2842_v42, %v2688_v38  ;;  %v1275_v38 = vld [vmem:[%s2980_s6 + $0x8] sm:$0xff] }
 0x67d   : > { %v2860_v28 = vpop.f32.mrf.mxu0 }
 0x67e   : > { %1827 = vrot.lane.b32.xlu0 %v1819_v33, %s2323_s8  ;;  %1727 = vrot.lane.b32.xlu1 %v1717_v20, %s2332_s29  ;;  %v1797_v39 = vmul.f32 %v2860_v28, %v2647_v19  ;;  %v1821_v7 = vmul.f32 %v2860_v28, %v2742_v12  ;;  %v1713_v15 = vadd.f32 %v1709_v60, %v1276_v26 }
 0x67f   : > { %v2874_v5 = vpop.f32.mrf.mxu0 }
 0x680   : > { %v1718_v19 = vmul.f32 %v2874_v5, %v2572_v44  ;;  %v1742_v12 = vmul.f32 %v2874_v5, %v2686_v37  ;;  %v1766_v44 = vmul.f32 %v2874_v5, %v2603_v59  ;;  %v1844_v37 = vmul.f32 %v2838_v17, %v2630_v11  ;;  %v2993_v59 = vld [vmem:[#allocation9_spill] sm:$0xff] }
 0x681   : > { %v2888_v8 = vpop.f32.mrf.mxu0  ;;  %v2244_v11 = vld [vmem:[%s2437_s25 + $0x8] sm:$0xff] }
 0x682   : > { %1851 = vrot.lane.b32.xlu0 %v1843_v45, %s2321_s30  ;;  %1751 = vrot.lane.b32.xlu1 %v1741_v51, %s2323_s8  ;;  %v1798_v46 = vmul.f32 %v2888_v8, %v2642_v55  ;;  %v1822_v41 = vmul.f32 %v2888_v8, %v2711_v13  ;;  %v1846_v32 = vmul.f32 %v2888_v8, %v2993_v59  ;;  %v2245_v13 = vld [vmem:[%s2437_s25 + $0x10] sm:$0xff] }
 0x683   : > { %v1845_v55 = vmul.f32 %v2860_v28, %v2994_v25 }
 0x686   : > { %1725 = vrot.lane.b32.xlu0 %v1716_v50, %s2332_s29  ;;  %1775 = vrot.lane.b32.xlu1 %v1765_v61, %s2321_s30 }
 0x68a   : > { %1749 = vrot.lane.b32.xlu0 %v1740_v14, %s2323_s8  ;;  %1807 = vrot.lane.b32.xlu1 %v1797_v39, %s2332_s29  ;;  %v1789_v14 = vmul.f32 %v2860_v28, %v2702_v58  ;;  %v1712_v39 = vadd.f32 %v1708_v31, %v1275_v38  ;;  %v1277_v58 = vld [vmem:[%s2980_s6 + $0x18] sm:$0xff]  ;;  %v1893_v38 = vsub.f32 1.0, %v2758_v22 }
 0x68e   : > { %1773 = vrot.lane.b32.xlu0 %v1764_v49, %s2321_s30  ;;  %1831 = vrot.lane.b32.xlu1 %v1821_v7, %s2323_s8 }
 0x692   : > { %1805 = vrot.lane.b32.xlu0 %v1796_v34, %s2332_s29  ;;  %1729 = vrot.lane.b32.xlu1 %v1718_v19, %s2332_s29 }
 0x696   : > { %1829 = vrot.lane.b32.xlu0 %v1820_v43, %s2323_s8  ;;  %1753 = vrot.lane.b32.xlu1 %v1742_v12, %s2323_s8 }
 0x69a   : > { %1777 = vrot.lane.b32.xlu0 %v1766_v44, %s2321_s30  ;;  %1809 = vrot.lane.b32.xlu1 %v1798_v46, %s2332_s29  ;;  %v1788_v46 = vmul.f32 %v2838_v17, %v2692_v40  ;;  %v1790_v40 = vmul.f32 %v2888_v8, %v2704_v63 }
 0x69e   : > { %1853 = vrot.lane.b32.xlu0 %v1844_v37, %s2321_s30  ;;  %1833 = vrot.lane.b32.xlu1 %v1822_v41, %s2323_s8  ;;  %v1710_v37 = vmul.f32 %v2874_v5, %v2684_v36 }
 0x6a0   : > { %v1714_v25 = vadd.f32 %v1710_v37, %v1277_v58 }
 0x6a2   : > { %1857 = vrot.lane.b32.xlu0 %v1846_v32, %s2321_s30  ;;  %1855 = vrot.lane.b32.xlu1 %v1845_v55, %s2321_s30 }
 0x6a6   : > { %1875 = vrot.lane.b32.xlu1 %v2243_v0, %s2321_s30 }
 0x6aa   : > { %1877 = vrot.lane.b32.xlu1 %v2244_v11, %s2321_s30 }
 0x6ae   : > { %1879 = vrot.lane.b32.xlu1 %v2245_v13, %s2321_s30 }
 0x6b2   : > { %1881 = vrot.lane.b32.xlu1 %v2246_v30, %s2321_s30 }
 0x6e8   : > { %v1724_v54 = vpop.permute.xlu1 %1723  ;;  %v1748_v16 = vpop.permute.xlu0 %1747 }
 0x6e9   : > { %v1735_v2 = vadd.f32 %v1724_v54, %v1711_v52 }
 0x6eb   : > { %v1759_v18 = vadd.f32 %v1748_v16, %v1735_v2 }
 0x6ec   : > { %v1804_v57 = vpop.permute.xlu1 %1803  ;;  %v1772_v29 = vpop.permute.xlu0 %1771 }
 0x6ed   : > { %v1783_v6 = vadd.f32 %v1772_v29, %v1759_v18 }
 0x6ef   : > { %v1791_v27 = vadd.f32 %v1787_v24, %v1783_v6 }
 0x6f0   : > { %v1728_v10 = vpop.permute.xlu1 %1727  ;;  %v1828_v9 = vpop.permute.xlu0 %1827 }
 0x6f1   : > { %v1815_v23 = vadd.f32 %v1804_v57, %v1791_v27  ;;  %v1737_v45 = vadd.f32 %v1728_v10, %v1713_v15 }
 0x6f3   : > { %v1839_v56 = vadd.f32 %v1828_v9, %v1815_v23  ;;  %v1891_v9 = vsub.f32 1.0, %v2750_v47 }
 0x6f4   : > { %v1852_v53 = vpop.permute.xlu0 %1851  ;;  %v1752_v33 = vpop.permute.xlu1 %1751 }
 0x6f5   : > { %v1863_v20 = vadd.f32 %v1852_v53, %v1839_v56  ;;  %v1761_v51 = vadd.f32 %v1752_v33, %v1737_v45  ;;  %v1892_v33 = vsub.f32 1.0, %v2754_v21 }
 0x6f7   : > { %2235 = vtanh.f32 %v1863_v20 }
 0x6f8   : > { %v1726_v42 = vpop.permute.xlu0 %1725  ;;  %v1776_v50 = vpop.permute.xlu1 %1775 }
 0x6f9   : > { %v1785_v61 = vadd.f32 %v1776_v50, %v1761_v51  ;;  %v1736_v34 = vadd.f32 %v1726_v42, %v1712_v39  ;;  %v1894_v39 = vsub.f32 1.0, %v2762_v62 }
 0x6fb   : > { %v1793_v49 = vadd.f32 %v1789_v14, %v1785_v61 }
 0x6fc   : > { %v1750_v7 = vpop.permute.xlu0 %1749  ;;  %v1808_v19 = vpop.permute.xlu1 %1807 }
 0x6fd   : > { %v1760_v43 = vadd.f32 %v1750_v7, %v1736_v34  ;;  %v1817_v2 = vadd.f32 %v1808_v19, %v1793_v49 }
 0x700   : > { %v1774_v12 = vpop.permute.xlu0 %1773  ;;  %v1832_v44 = vpop.permute.xlu1 %1831 }
 0x701   : > { %v1784_v1 = vadd.f32 %v1774_v12, %v1760_v43  ;;  %v1841_v18 = vadd.f32 %v1832_v44, %v1817_v2 }
 0x703   : > { %v1792_v41 = vadd.f32 %v1788_v46, %v1784_v1 }
 0x704   : > { %v2236_v59 = vpop.eup %2235  ;;  %v1806_v28 = vpop.permute.xlu0 %1805 }
 0x705   : > { %v1730_v32 = vpop.permute.xlu1 %1729  ;;  %1899 = vrot.lane.b32.xlu0 %v2236_v59, %s2321_s30  ;;  %v1816_v36 = vadd.f32 %v1806_v28, %v1792_v41 }
 0x706   : > { %v1738_v0 = vadd.f32 %v1730_v32, %v1714_v25 }
 0x708   : > { %v1830_v55 = vpop.permute.xlu0 %1829 }
 0x709   : > { %v1754_v11 = vpop.permute.xlu1 %1753  ;;  %v1840_v3 = vadd.f32 %v1830_v55, %v1816_v36 }
 0x70a   : > { %v1762_v13 = vadd.f32 %v1754_v11, %v1738_v0 }
 0x70c   : > { %v1778_v30 = vpop.permute.xlu0 %1777 }
 0x70d   : > { %v1810_v17 = vpop.permute.xlu1 %1809  ;;  %v1786_v5 = vadd.f32 %v1778_v30, %v1762_v13 }
 0x70f   : > { %v1794_v48 = vadd.f32 %v1790_v40, %v1786_v5 }
 0x710   : > { %v1854_v4 = vpop.permute.xlu0 %1853 }
 0x711   : > { %v1834_v52 = vpop.permute.xlu1 %1833  ;;  %v1818_v54 = vadd.f32 %v1810_v17, %v1794_v48  ;;  %v1864_v16 = vadd.f32 %v1854_v4, %v1840_v3 }
 0x713   : > { %2237 = vtanh.f32 %v1864_v16  ;;  %v1842_v57 = vadd.f32 %v1834_v52, %v1818_v54 }
 0x714   : > { %v1858_v24 = vpop.permute.xlu0 %1857 }
 0x715   : > { %v1856_v29 = vpop.permute.xlu1 %1855  ;;  %v1866_v27 = vadd.f32 %v1858_v24, %v1842_v57 }
 0x716   : > { %v1865_v6 = vadd.f32 %v1856_v29, %v1841_v18 }
 0x718   : > { %2239 = vtanh.f32 %v1865_v6 }
 0x719   : > { %2241 = vtanh.f32 %v1866_v27  ;;  %v1876_v60 = vpop.permute.xlu1 %1875 }
 0x71a   : > { %v1887_v23 = vmul.f32 %v2750_v47, %v1876_v60 }
 0x71d   : > { %v1878_v53 = vpop.permute.xlu1 %1877 }
 0x71e   : > { %v1888_v45 = vmul.f32 %v2754_v21, %v1878_v53 }
 0x720   : > { %v2238_v63 = vpop.eup %2237 }
 0x721   : > { %1901 = vrot.lane.b32.xlu0 %v2238_v63, %s2321_s30  ;;  %v1880_v35 = vpop.permute.xlu1 %1879 }
 0x722   : > { %v1889_v47 = vmul.f32 %v2758_v22, %v1880_v35 }
 0x725   : > { %v2240_v8 = vpop.eup %2239  ;;  %v1882_v61 = vpop.permute.xlu1 %1881 }
 0x726   : > { %1903 = vrot.lane.b32.xlu0 %v2240_v8, %s2321_s30  ;;  %v2242_v10 = vpop.eup %2241  ;;  %v1890_v7 = vmul.f32 %v2762_v62, %v1882_v61 }
 0x72a   : > { %1905 = vrot.lane.b32.xlu0 %v2242_v10, %s2321_s30 }
 0x777   : > { %v1900_v26 = vpop.permute.xlu0 %1899 }
 0x778   : > { %v1911_v56 = vmul.f32 %v1900_v26, %v1891_v9 }
 0x77a   : > { %v1915_v15 = vadd.f32 %v1911_v56, %v1887_v23 }
 0x77c   : > { %1923 = vrot.lane.b32.xlu1 %v1915_v15, %s2332_s29 }
 0x793   : > { %v1902_v20 = vpop.permute.xlu0 %1901 }
 0x794   : > { %v1912_v31 = vmul.f32 %v1902_v20, %v1892_v33 }
 0x796   : > { %v1916_v51 = vadd.f32 %v1912_v31, %v1888_v45 }
 0x798   : > { %v1904_v42 = vpop.permute.xlu0 %1903  ;;  %1925 = vrot.lane.b32.xlu0 %v1916_v51, %s2332_s29 }
 0x799   : > { %v1913_v50 = vmul.f32 %v1904_v42, %v1893_v38 }
 0x79b   : > { %v1917_v14 = vadd.f32 %v1913_v50, %v1889_v47 }
 0x79c   : > { %v1906_v49 = vpop.permute.xlu0 %1905 }
 0x79d   : > { %v1914_v21 = vmul.f32 %v1906_v49, %v1894_v39  ;;  %1927 = vrot.lane.b32.xlu1 %v1917_v14, %s2332_s29 }
 0x79f   : > { %v1918_v34 = vadd.f32 %v1914_v21, %v1890_v7 }
 0x7a1   : > { %1929 = vrot.lane.b32.xlu0 %v1918_v34, %s2332_s29 }
 0x7ee   : > { %v1924_v22 = vpop.permute.xlu1 %1923 }
 0x7ef   : > { %1935 = vst.msk [vmem:[%s310_s16] sm:$0xff] %vm721_vm1, %v1924_v22 }
 0x80a   : > { %v1926_v19 = vpop.permute.xlu0 %1925 }
 0x80b   : > { %1936 = vst.msk [vmem:[%s310_s16 + $0x8] sm:$0xff] %vm721_vm1, %v1926_v19 }
 0x80f   : > { %v1928_v43 = vpop.permute.xlu1 %1927 }
 0x810   : > { %1937 = vst.msk [vmem:[%s310_s16 + $0x10] sm:$0xff] %vm721_vm1, %v1928_v43 }
 0x813   : > { %v1930_v62 = vpop.permute.xlu0 %1929 }
 0x814   : > { %1938 = vst.msk [vmem:[%s310_s16 + $0x18] sm:$0xff] %vm721_vm1, %v1930_v62 }
 0x815 PF: > { %s19_s24 = sadd.s32 1, %s2313_s24  }
 0x816   : > { %p16_p2 = scmp.ge.s32.totalorder %s19_s24, 4  }
 0x818   :  { %18 = sbr.rel (!%p16_p2) target bundleno = 2 (0x2), region = 87 }
 0x81d   :  { %1961 = vsyncpa [#allocation3], 1 }
 0x81e   :  { %1963 = vsyncpa [#allocation3 + $0x1], 1 }
 0x81f   :  { %1964 = vsyncpa [#allocation5], 1 }

</bundles_post_ra>
